<compile_context>
chip_gen: v6e
topology: v6e:2x2x1
jax: 0.10.0
libtpu: 0.0.40
codegen_flags: <defaults>
</compile_context>

<pallas_src>
import math
from functools import partial

import jax
import jax.numpy as jnp
from jax.experimental import pallas as pl
from jax.experimental.pallas import tpu as pltpu

EPS = 1e-6  # norm_layer = partial(nn.LayerNorm, eps=1e-6)


def _layer_norm(x, gamma, beta):
    mu = jnp.mean(x, axis=-1, keepdims=True)
    var = jnp.mean((x - mu) ** 2, axis=-1, keepdims=True)
    return (x - mu) * jax.lax.rsqrt(var + EPS) * gamma + beta


def _gelu_tanh(x):
    # tanh-approximate GELU; tanh lowers to the EUP slot (VALU stays free).
    c = math.sqrt(2.0 / math.pi)
    return 0.5 * x * (1.0 + jnp.tanh(c * (x + 0.044715 * x * x * x)))


def transformer_kernel(x_ref,
                       g1_ref, b1_ref, wqkv_ref, bqkv_ref, wo_ref, bo_ref,
                       g2_ref, b2_ref, wfc1_ref, bfc1_ref, wfc2_ref, bfc2_ref,
                       gf_ref, bf_ref, out_ref, *, num_layers, num_heads):
    x = x_ref[0].astype(jnp.float32)                                # (S, D)
    S, D = x.shape
    H = num_heads
    hd = D // H
    scale = 1.0 / math.sqrt(hd)

    # All encoder blocks fused; static Python loop is unrolled at trace time.
    for l in range(num_layers):
        # ---- LN1 + per-head-blocked QKV projection (bf16 ops, f32 MXU acc) ----
        h = _layer_norm(x, g1_ref[l], b1_ref[l]).astype(jnp.bfloat16)      # (S, D)
        hb = jnp.broadcast_to(h, (3 * H, S, D))                            # (3H,S,D)
        qkv = jnp.einsum('nsd,ndk->nsk', hb, wqkv_ref[l],
                         preferred_element_type=jnp.float32) + bqkv_ref[l]  # (3H,S,hd)
        qh = (qkv[0:H] * scale).astype(jnp.bfloat16)                        # (H,S,hd)
        kh = qkv[H:2 * H].astype(jnp.bfloat16)
        vh = qkv[2 * H:3 * H].astype(jnp.bfloat16)

        # ---- attention, all heads batched along the leading dim ----
        s = jnp.einsum('hqd,hkd->hqk', qh, kh,
                       preferred_element_type=jnp.float32)                  # (H,S,S)
        s = s - jnp.max(s, axis=-1, keepdims=True)
        e = jnp.exp(s)
        p = e * pl.reciprocal(jnp.sum(e, axis=-1, keepdims=True), approx=True)
        ctx = jnp.einsum('hqk,hkd->hqd', p.astype(jnp.bfloat16), vh,
                         preferred_element_type=jnp.float32)                # (H,S,hd)

        # ---- out-projection: per-head partials, summed (no concat/transpose) ----
        po = jnp.einsum('hsd,hde->hse', ctx.astype(jnp.bfloat16), wo_ref[l],
                        preferred_element_type=jnp.float32)                 # (H,S,D)
        attn = po[0]
        for i in range(1, H):           # unrolled head-sum: cheap leading-dim selects
            attn = attn + po[i]
        attn = attn + bo_ref[l]
        x2 = x + attn                                                       # residual 1

        # ---- LN2 + MLP ----
        y = _layer_norm(x2, g2_ref[l], b2_ref[l])
        y = jnp.dot(y.astype(jnp.bfloat16), wfc1_ref[l],
                    preferred_element_type=jnp.float32) + bfc1_ref[l]
        y = _gelu_tanh(y)
        y = jnp.dot(y.astype(jnp.bfloat16), wfc2_ref[l],
                    preferred_element_type=jnp.float32) + bfc2_ref[l]
        x = x2 + y                                                          # residual 2

    out = _layer_norm(x, gf_ref[...], bf_ref[...])                          # fused final LN
    out_ref[0] = out.astype(out_ref.dtype)


def layernorm_kernel(x_ref, g_ref, b_ref, out_ref):
    # Only for the degenerate num_layers == 0 case.
    x = x_ref[0].astype(jnp.float32)
    out_ref[0] = _layer_norm(x, g_ref[...], b_ref[...]).astype(out_ref.dtype)


def _const_spec(shape):
    # weight / bias: whole array resident, same block for every grid step
    zeros = (0,) * len(shape)
    return pl.BlockSpec(shape, lambda *_: zeros)


def transformer_forward(x, params, num_heads):
    B, S, D = x.shape
    L = params["wqkv"].shape[0]
    H = num_heads
    hd = D // H

    if L == 0:
        return pl.pallas_call(
            layernorm_kernel,
            out_shape=jax.ShapeDtypeStruct((B, S, D), x.dtype),
            grid=(B,),
            in_specs=[pl.BlockSpec((1, S, D), lambda b: (b, 0, 0)),
                      _const_spec((1, D)), _const_spec((1, D))],
            out_specs=pl.BlockSpec((1, S, D), lambda b: (b, 0, 0)),
            compiler_params=pltpu.CompilerParams(
                dimension_semantics=("parallel",)),
        )(x, params["ln_g"], params["ln_b"])

    M = params["w_fc1"].shape[2]

    # ---- wrapper-side weight re-blocking (pure layout, outside the kernel) ----
    # fused qkv (L, D, 3D) -> per-head blocked (L, 3H, D, hd); out-proj
    # (L, D, D) -> (L, H, hd, D); biases to broadcast-ready shapes.  This is what
    # lets the kernel avoid every per-head lane slice / stack / concat relayout.
    wqkv_h = jnp.transpose(params["wqkv"].reshape(L, D, 3, H, hd),
                           (0, 2, 3, 1, 4)).reshape(L, 3 * H, D, hd)
    bqkv_h = params["bqkv"].reshape(L, 3, H, hd).reshape(L, 3 * H, 1, hd)
    wo_h = params["wo"].reshape(L, H, hd, D)

    args = [x,
            params["g1"], params["b1"], wqkv_h, bqkv_h, wo_h, params["bo"],
            params["g2"], params["b2"],
            params["w_fc1"], params["b_fc1"], params["w_fc2"], params["b_fc2"],
            params["ln_g"], params["ln_b"]]

    in_specs = [
        pl.BlockSpec((1, S, D), lambda b: (b, 0, 0)),          # activations (per batch)
        _const_spec((L, 1, D)), _const_spec((L, 1, D)),        # ln1 gamma/beta
        _const_spec((L, 3 * H, D, hd)),                        # per-head qkv weights
        _const_spec((L, 3 * H, 1, hd)),                        # per-head qkv biases
        _const_spec((L, H, hd, D)), _const_spec((L, 1, D)),    # out proj
        _const_spec((L, 1, D)), _const_spec((L, 1, D)),        # ln2 gamma/beta
        _const_spec((L, D, M)), _const_spec((L, 1, M)),        # mlp fc1
        _const_spec((L, M, D)), _const_spec((L, 1, D)),        # mlp fc2
        _const_spec((1, D)), _const_spec((1, D)),              # final ln
    ]

    # --- cost estimate (helps XLA schedule around the custom call) ---
    flops = B * L * (2 * S * D * (3 * D + D + 2 * M) + 4 * S * S * D)
    transc = B * L * (H * S * S + S * M)
    wbytes = 2 * L * (D * 3 * D + D * D + 2 * D * M)           # bf16 weights
    pbytes = 4 * (L * (9 * D + M) + 2 * D)                     # f32 vectors
    bytes_accessed = 2 * B * S * D * 4 + wbytes + pbytes

    # --- VMEM budget from the actual footprint (no 32 MiB floor), v7x-safe cap ---
    abytes = 2 * 2 * S * D * 4                                 # in/out tiles, dbl-buffered
    vmem_limit = int(min(2 * (wbytes + pbytes) + abytes + (4 << 20), 48 << 20))

    return pl.pallas_call(
        partial(transformer_kernel, num_layers=L, num_heads=H),
        out_shape=jax.ShapeDtypeStruct((B, S, D), x.dtype),
        grid=(B,),
        in_specs=in_specs,
        out_specs=pl.BlockSpec((1, S, D), lambda b: (b, 0, 0)),
        compiler_params=pltpu.CompilerParams(
            dimension_semantics=("parallel",),        # 2 steps -> both v7x TCs busy
            vmem_limit_bytes=vmem_limit),
        cost_estimate=pl.CostEstimate(flops=flops, transcendentals=transc,
                                      bytes_accessed=bytes_accessed),
    )(*args)


def transformer_reference(x, p, num_heads):
    # Pure-JAX f32 reference (exact softmax, exact erf GELU) on the same
    # bf16-valued weights; used only for the tolerance check in __main__.
    B, S, D = x.shape
    L = p["wqkv"].shape[0]
    H = num_heads
    hd = D // H

    def ln(v, g, b):
        mu = jnp.mean(v, axis=-1, keepdims=True)
        var = jnp.mean((v - mu) ** 2, axis=-1, keepdims=True)
        return (v - mu) / jnp.sqrt(var + EPS) * g + b

    x = x.astype(jnp.float32)
    for l in range(L):
        h = ln(x, p["g1"][l], p["b1"][l])
        qkv = h @ p["wqkv"][l].astype(jnp.float32) + p["bqkv"][l]
        q, k, v = jnp.split(qkv, 3, axis=-1)
        q = q.reshape(B, S, H, hd).transpose(0, 2, 1, 3) / math.sqrt(hd)
        k = k.reshape(B, S, H, hd).transpose(0, 2, 1, 3)
        v = v.reshape(B, S, H, hd).transpose(0, 2, 1, 3)
        a = jax.nn.softmax(q @ k.transpose(0, 1, 3, 2), axis=-1)
        ctx = (a @ v).transpose(0, 2, 1, 3).reshape(B, S, D)
        attn = ctx @ p["wo"][l].astype(jnp.float32) + p["bo"][l]
        x2 = x + attn
        y = ln(x2, p["g2"][l], p["b2"][l])
        y = y @ p["w_fc1"][l].astype(jnp.float32) + p["b_fc1"][l]
        y = jax.nn.gelu(y, approximate=False)
        y = y @ p["w_fc2"][l].astype(jnp.float32) + p["b_fc2"][l]
        x = x2 + y
    return ln(x, p["ln_g"], p["ln_b"])


def init_params(key, num_layers, hidden_dim, mlp_dim):
    D, M, L = hidden_dim, mlp_dim, num_layers
    ks = jax.random.split(key, 12)

    def w(k, shape):
        # weights stored in bf16 (halves weight DMA / VMEM residency);
        # matmuls accumulate in f32 inside the kernel.
        return (0.02 * jax.random.normal(k, shape, jnp.float32)).astype(jnp.bfloat16)

    def v(k, shape, loc=0.0, scale=0.02):
        return loc + scale * jax.random.normal(k, shape, jnp.float32)

    return dict(
        g1=v(ks[0], (L, 1, D), loc=1.0, scale=0.1),
        b1=v(ks[1], (L, 1, D), scale=0.1),
        wqkv=w(ks[2], (L, D, 3 * D)),
        bqkv=v(ks[3], (L, 1, 3 * D)),
        wo=w(ks[4], (L, D, D)),
        bo=v(ks[5], (L, 1, D)),
        g2=v(ks[6], (L, 1, D), loc=1.0, scale=0.1),
        b2=v(ks[7], (L, 1, D), scale=0.1),
        w_fc1=w(ks[8], (L, D, M)),
        b_fc1=v(ks[9], (L, 1, M)),
        w_fc2=w(ks[10], (L, M, D)),
        b_fc2=v(ks[11], (L, 1, D)),
        ln_g=jnp.ones((1, D), jnp.float32),
        ln_b=jnp.zeros((1, D), jnp.float32),
    )


if __name__ == "__main__":
    # Small config: num_layers=2, num_heads=4, hidden_dim=32, mlp_dim=64
    num_layers, num_heads, hidden_dim, mlp_dim = 2, 4, 32, 64
    batch, seq = 2, 8

    key = jax.random.PRNGKey(0)
    k_param, k_input = jax.random.split(key)
    params = init_params(k_param, num_layers, hidden_dim, mlp_dim)
    x = jax.random.normal(k_input, (batch, seq, hidden_dim), jnp.float32)

    fwd = jax.jit(partial(transformer_forward, num_heads=num_heads))
    out = jax.block_until_ready(fwd(x, params))

    assert out.shape == (batch, seq, hidden_dim)
    assert bool(jnp.all(jnp.isfinite(out)))

    # tolerance-asserted pure-JAX reference (covers bf16 matmul operands,
    # tanh-approx GELU and approx-reciprocal softmax deviations).
    ref = transformer_reference(x, params, num_heads)
    err = float(jnp.max(jnp.abs(out - ref)))
    assert err < 5e-2, f"max abs error vs reference: {err}"

    print("KERNEL_OK")
</pallas_src>

<mosaic_0001>
module attributes {stable_mosaic.version = 11 : i64} {
  func.func @transformer_kernel(%arg0: i32, %arg1: memref<1x8x32xf32, #tpu.memory_space<vmem>>, %arg2: memref<2x1x32xf32, #tpu.memory_space<vmem>>, %arg3: memref<2x1x32xf32, #tpu.memory_space<vmem>>, %arg4: memref<2x12x32x8xbf16, #tpu.memory_space<vmem>>, %arg5: memref<2x12x1x8xf32, #tpu.memory_space<vmem>>, %arg6: memref<2x4x8x32xbf16, #tpu.memory_space<vmem>>, %arg7: memref<2x1x32xf32, #tpu.memory_space<vmem>>, %arg8: memref<2x1x32xf32, #tpu.memory_space<vmem>>, %arg9: memref<2x1x32xf32, #tpu.memory_space<vmem>>, %arg10: memref<2x32x64xbf16, #tpu.memory_space<vmem>>, %arg11: memref<2x1x64xf32, #tpu.memory_space<vmem>>, %arg12: memref<2x64x32xbf16, #tpu.memory_space<vmem>>, %arg13: memref<2x1x32xf32, #tpu.memory_space<vmem>>, %arg14: memref<1x32xf32, #tpu.memory_space<vmem>>, %arg15: memref<1x32xf32, #tpu.memory_space<vmem>>, %arg16: memref<1x8x32xf32, #tpu.memory_space<vmem>>) attributes {dimension_semantics = [#tpu.dimension_semantics<parallel>], iteration_bounds = array<i64: 2>, scalar_prefetch = 0 : i64, scratch_operands = 0 : i64, tpu.core_type = #tpu.core_type<tc>, window_params = [{transform_indices = @transform_0, window_bounds = array<i64: 1, 8, 32>}, {pipeline_mode = #tpu.pipeline_mode<synchronous>, transform_indices = @transform_1, window_bounds = array<i64: 2, 1, 32>}, {pipeline_mode = #tpu.pipeline_mode<synchronous>, transform_indices = @transform_2, window_bounds = array<i64: 2, 1, 32>}, {pipeline_mode = #tpu.pipeline_mode<synchronous>, transform_indices = @transform_3, window_bounds = array<i64: 2, 12, 32, 8>}, {pipeline_mode = #tpu.pipeline_mode<synchronous>, transform_indices = @transform_4, window_bounds = array<i64: 2, 12, 1, 8>}, {pipeline_mode = #tpu.pipeline_mode<synchronous>, transform_indices = @transform_5, window_bounds = array<i64: 2, 4, 8, 32>}, {pipeline_mode = #tpu.pipeline_mode<synchronous>, transform_indices = @transform_6, window_bounds = array<i64: 2, 1, 32>}, {pipeline_mode = #tpu.pipeline_mode<synchronous>, transform_indices = @transform_7, window_bounds = array<i64: 2, 1, 32>}, {pipeline_mode = #tpu.pipeline_mode<synchronous>, transform_indices = @transform_8, window_bounds = array<i64: 2, 1, 32>}, {pipeline_mode = #tpu.pipeline_mode<synchronous>, transform_indices = @transform_9, window_bounds = array<i64: 2, 32, 64>}, {pipeline_mode = #tpu.pipeline_mode<synchronous>, transform_indices = @transform_10, window_bounds = array<i64: 2, 1, 64>}, {pipeline_mode = #tpu.pipeline_mode<synchronous>, transform_indices = @transform_11, window_bounds = array<i64: 2, 64, 32>}, {pipeline_mode = #tpu.pipeline_mode<synchronous>, transform_indices = @transform_12, window_bounds = array<i64: 2, 1, 32>}, {pipeline_mode = #tpu.pipeline_mode<synchronous>, transform_indices = @transform_13, window_bounds = array<i64: 1, 32>}, {pipeline_mode = #tpu.pipeline_mode<synchronous>, transform_indices = @transform_14, window_bounds = array<i64: 1, 32>}, {transform_indices = @transform_15, window_bounds = array<i64: 1, 8, 32>}]} {
    %c0 = arith.constant 0 : index
    %c0_0 = arith.constant 0 : index
    %c0_1 = arith.constant 0 : index
    %0 = vector.load %arg1[%c0, %c0_0, %c0_1] : memref<1x8x32xf32, #tpu.memory_space<vmem>>, vector<1x8x32xf32>
    %1 = vector.shape_cast %0 : vector<1x8x32xf32> to vector<8x32xf32>
    %c0_2 = arith.constant 0 : index
    %c0_3 = arith.constant 0 : index
    %c0_4 = arith.constant 0 : index
    %2 = vector.load %arg2[%c0_2, %c0_3, %c0_4] : memref<2x1x32xf32, #tpu.memory_space<vmem>>, vector<1x1x32xf32>
    %3 = vector.shape_cast %2 : vector<1x1x32xf32> to vector<1x32xf32>
    %c0_5 = arith.constant 0 : index
    %c0_6 = arith.constant 0 : index
    %c0_7 = arith.constant 0 : index
    %4 = vector.load %arg3[%c0_5, %c0_6, %c0_7] : memref<2x1x32xf32, #tpu.memory_space<vmem>>, vector<1x1x32xf32>
    %5 = vector.shape_cast %4 : vector<1x1x32xf32> to vector<1x32xf32>
    %cst = arith.constant dense<0.000000e+00> : vector<8xf32>
    %6 = vector.multi_reduction <add>, %1, %cst [1] : vector<8x32xf32> to vector<8xf32>
    %7 = vector.shape_cast %6 : vector<8xf32> to vector<8x1xf32>
    %cst_8 = arith.constant 3.200000e+01 : f32
    %8 = vector.broadcast %cst_8 : f32 to vector<8x1xf32>
    %9 = arith.divf %7, %8 : vector<8x1xf32>
    %10 = vector.broadcast %9 : vector<8x1xf32> to vector<8x32xf32>
    %11 = arith.subf %1, %10 : vector<8x32xf32>
    %12 = arith.mulf %11, %11 : vector<8x32xf32>
    %cst_9 = arith.constant dense<0.000000e+00> : vector<8xf32>
    %13 = vector.multi_reduction <add>, %12, %cst_9 [1] : vector<8x32xf32> to vector<8xf32>
    %14 = vector.shape_cast %13 : vector<8xf32> to vector<8x1xf32>
    %cst_10 = arith.constant 3.200000e+01 : f32
    %15 = vector.broadcast %cst_10 : f32 to vector<8x1xf32>
    %16 = arith.divf %14, %15 : vector<8x1xf32>
    %17 = vector.broadcast %9 : vector<8x1xf32> to vector<8x32xf32>
    %18 = arith.subf %1, %17 : vector<8x32xf32>
    %cst_11 = arith.constant 9.99999997E-7 : f32
    %19 = vector.broadcast %cst_11 : f32 to vector<8x1xf32>
    %20 = arith.addf %16, %19 : vector<8x1xf32>
    %21 = math.rsqrt %20 : vector<8x1xf32>
    %22 = vector.broadcast %21 : vector<8x1xf32> to vector<8x32xf32>
    %23 = arith.mulf %18, %22 : vector<8x32xf32>
    %24 = vector.broadcast %3 : vector<1x32xf32> to vector<8x32xf32>
    %25 = arith.mulf %23, %24 : vector<8x32xf32>
    %26 = vector.broadcast %5 : vector<1x32xf32> to vector<8x32xf32>
    %27 = arith.addf %25, %26 : vector<8x32xf32>
    %28 = arith.truncf %27 : vector<8x32xf32> to vector<8x32xbf16>
    %29 = vector.shape_cast %28 : vector<8x32xbf16> to vector<1x8x32xbf16>
    %30 = vector.broadcast %29 : vector<1x8x32xbf16> to vector<12x8x32xbf16>
    %c0_12 = arith.constant 0 : index
    %c0_13 = arith.constant 0 : index
    %c0_14 = arith.constant 0 : index
    %c0_15 = arith.constant 0 : index
    %31 = vector.load %arg4[%c0_12, %c0_13, %c0_14, %c0_15] : memref<2x12x32x8xbf16, #tpu.memory_space<vmem>>, vector<1x12x32x8xbf16>
    %32 = vector.shape_cast %31 : vector<1x12x32x8xbf16> to vector<12x32x8xbf16>
    "tpu.trace_start"() <{level = 10 : i32, message = "nsd,ndk->nsk"}> : () -> ()
    %cst_16 = arith.constant dense<0.000000e+00> : vector<12x8x8xf32>
    %33 = tpu.matmul %30, %32, %cst_16 {dimension_numbers = #tpu.dot_dimension_numbers<[2], [1], [1], [2], [0, 0, 0, 1, 1, 2], [0], [0]>} : vector<12x8x32xbf16>, vector<12x32x8xbf16>, vector<12x8x8xf32> -> vector<12x8x8xf32>
    "tpu.trace_stop"() : () -> ()
    %c0_17 = arith.constant 0 : index
    %c0_18 = arith.constant 0 : index
    %c0_19 = arith.constant 0 : index
    %c0_20 = arith.constant 0 : index
    %34 = vector.load %arg5[%c0_17, %c0_18, %c0_19, %c0_20] : memref<2x12x1x8xf32, #tpu.memory_space<vmem>>, vector<1x12x1x8xf32>
    %35 = vector.shape_cast %34 : vector<1x12x1x8xf32> to vector<12x1x8xf32>
    %36 = vector.broadcast %35 : vector<12x1x8xf32> to vector<12x8x8xf32>
    %37 = arith.addf %33, %36 : vector<12x8x8xf32>
    %38 = vector.extract_strided_slice %37 {offsets = [0, 0, 0], sizes = [4, 8, 8], strides = [1, 1, 1]} : vector<12x8x8xf32> to vector<4x8x8xf32>
    %cst_21 = arith.constant 0.353553385 : f32
    %39 = vector.broadcast %cst_21 : f32 to vector<4x8x8xf32>
    %40 = arith.mulf %38, %39 : vector<4x8x8xf32>
    %41 = arith.truncf %40 : vector<4x8x8xf32> to vector<4x8x8xbf16>
    %42 = vector.extract_strided_slice %37 {offsets = [4, 0, 0], sizes = [4, 8, 8], strides = [1, 1, 1]} : vector<12x8x8xf32> to vector<4x8x8xf32>
    %43 = arith.truncf %42 : vector<4x8x8xf32> to vector<4x8x8xbf16>
    %44 = vector.extract_strided_slice %37 {offsets = [8, 0, 0], sizes = [4, 8, 8], strides = [1, 1, 1]} : vector<12x8x8xf32> to vector<4x8x8xf32>
    %45 = arith.truncf %44 : vector<4x8x8xf32> to vector<4x8x8xbf16>
    "tpu.trace_start"() <{level = 10 : i32, message = "hqd,hkd->hqk"}> : () -> ()
    %cst_22 = arith.constant dense<0.000000e+00> : vector<4x8x8xf32>
    %46 = tpu.matmul %41, %43, %cst_22 {dimension_numbers = #tpu.dot_dimension_numbers<[2], [2], [1], [1], [0, 0, 0, 1, 1, 1], [0], [0]>} : vector<4x8x8xbf16>, vector<4x8x8xbf16>, vector<4x8x8xf32> -> vector<4x8x8xf32>
    "tpu.trace_stop"() : () -> ()
    %cst_23 = arith.constant dense<0xFF800000> : vector<4x8xf32>
    %47 = vector.multi_reduction <maximumf>, %46, %cst_23 [2] : vector<4x8x8xf32> to vector<4x8xf32>
    %48 = vector.shape_cast %47 : vector<4x8xf32> to vector<4x8x1xf32>
    %49 = vector.broadcast %48 : vector<4x8x1xf32> to vector<4x8x8xf32>
    %50 = arith.subf %46, %49 : vector<4x8x8xf32>
    %51 = math.exp %50 : vector<4x8x8xf32>
    %cst_24 = arith.constant dense<0.000000e+00> : vector<4x8xf32>
    %52 = vector.multi_reduction <add>, %51, %cst_24 [2] : vector<4x8x8xf32> to vector<4x8xf32>
    %53 = vector.shape_cast %52 : vector<4x8xf32> to vector<4x8x1xf32>
    %54 = tpu.reciprocal %53 {approx = true} : vector<4x8x1xf32> -> vector<4x8x1xf32>
    %55 = vector.broadcast %54 : vector<4x8x1xf32> to vector<4x8x8xf32>
    %56 = arith.mulf %51, %55 : vector<4x8x8xf32>
    %57 = arith.truncf %56 : vector<4x8x8xf32> to vector<4x8x8xbf16>
    "tpu.trace_start"() <{level = 10 : i32, message = "hqk,hkd->hqd"}> : () -> ()
    %cst_25 = arith.constant dense<0.000000e+00> : vector<4x8x8xf32>
    %58 = tpu.matmul %57, %45, %cst_25 {dimension_numbers = #tpu.dot_dimension_numbers<[2], [1], [1], [2], [0, 0, 0, 1, 1, 2], [0], [0]>} : vector<4x8x8xbf16>, vector<4x8x8xbf16>, vector<4x8x8xf32> -> vector<4x8x8xf32>
    "tpu.trace_stop"() : () -> ()
    %59 = arith.truncf %58 : vector<4x8x8xf32> to vector<4x8x8xbf16>
    %c0_26 = arith.constant 0 : index
    %c0_27 = arith.constant 0 : index
    %c0_28 = arith.constant 0 : index
    %c0_29 = arith.constant 0 : index
    %60 = vector.load %arg6[%c0_26, %c0_27, %c0_28, %c0_29] : memref<2x4x8x32xbf16, #tpu.memory_space<vmem>>, vector<1x4x8x32xbf16>
    %61 = vector.shape_cast %60 : vector<1x4x8x32xbf16> to vector<4x8x32xbf16>
    "tpu.trace_start"() <{level = 10 : i32, message = "hsd,hde->hse"}> : () -> ()
    %cst_30 = arith.constant dense<0.000000e+00> : vector<4x8x32xf32>
    %62 = tpu.matmul %59, %61, %cst_30 {dimension_numbers = #tpu.dot_dimension_numbers<[2], [1], [1], [2], [0, 0, 0, 1, 1, 2], [0], [0]>} : vector<4x8x8xbf16>, vector<4x8x32xbf16>, vector<4x8x32xf32> -> vector<4x8x32xf32>
    "tpu.trace_stop"() : () -> ()
    %63 = vector.extract_strided_slice %62 {offsets = [0, 0, 0], sizes = [1, 8, 32], strides = [1, 1, 1]} : vector<4x8x32xf32> to vector<1x8x32xf32>
    %64 = vector.shape_cast %63 : vector<1x8x32xf32> to vector<8x32xf32>
    %65 = vector.extract_strided_slice %62 {offsets = [1, 0, 0], sizes = [1, 8, 32], strides = [1, 1, 1]} : vector<4x8x32xf32> to vector<1x8x32xf32>
    %66 = vector.shape_cast %65 : vector<1x8x32xf32> to vector<8x32xf32>
    %67 = arith.addf %64, %66 : vector<8x32xf32>
    %68 = vector.extract_strided_slice %62 {offsets = [2, 0, 0], sizes = [1, 8, 32], strides = [1, 1, 1]} : vector<4x8x32xf32> to vector<1x8x32xf32>
    %69 = vector.shape_cast %68 : vector<1x8x32xf32> to vector<8x32xf32>
    %70 = arith.addf %67, %69 : vector<8x32xf32>
    %71 = vector.extract_strided_slice %62 {offsets = [3, 0, 0], sizes = [1, 8, 32], strides = [1, 1, 1]} : vector<4x8x32xf32> to vector<1x8x32xf32>
    %72 = vector.shape_cast %71 : vector<1x8x32xf32> to vector<8x32xf32>
    %73 = arith.addf %70, %72 : vector<8x32xf32>
    %c0_31 = arith.constant 0 : index
    %c0_32 = arith.constant 0 : index
    %c0_33 = arith.constant 0 : index
    %74 = vector.load %arg7[%c0_31, %c0_32, %c0_33] : memref<2x1x32xf32, #tpu.memory_space<vmem>>, vector<1x1x32xf32>
    %75 = vector.shape_cast %74 : vector<1x1x32xf32> to vector<1x32xf32>
    %76 = vector.broadcast %75 : vector<1x32xf32> to vector<8x32xf32>
    %77 = arith.addf %73, %76 : vector<8x32xf32>
    %78 = arith.addf %1, %77 : vector<8x32xf32>
    %c0_34 = arith.constant 0 : index
    %c0_35 = arith.constant 0 : index
    %c0_36 = arith.constant 0 : index
    %79 = vector.load %arg8[%c0_34, %c0_35, %c0_36] : memref<2x1x32xf32, #tpu.memory_space<vmem>>, vector<1x1x32xf32>
    %80 = vector.shape_cast %79 : vector<1x1x32xf32> to vector<1x32xf32>
    %c0_37 = arith.constant 0 : index
    %c0_38 = arith.constant 0 : index
    %c0_39 = arith.constant 0 : index
    %81 = vector.load %arg9[%c0_37, %c0_38, %c0_39] : memref<2x1x32xf32, #tpu.memory_space<vmem>>, vector<1x1x32xf32>
    %82 = vector.shape_cast %81 : vector<1x1x32xf32> to vector<1x32xf32>
    %cst_40 = arith.constant dense<0.000000e+00> : vector<8xf32>
    %83 = vector.multi_reduction <add>, %78, %cst_40 [1] : vector<8x32xf32> to vector<8xf32>
    %84 = vector.shape_cast %83 : vector<8xf32> to vector<8x1xf32>
    %cst_41 = arith.constant 3.200000e+01 : f32
    %85 = vector.broadcast %cst_41 : f32 to vector<8x1xf32>
    %86 = arith.divf %84, %85 : vector<8x1xf32>
    %87 = vector.broadcast %86 : vector<8x1xf32> to vector<8x32xf32>
    %88 = arith.subf %78, %87 : vector<8x32xf32>
    %89 = arith.mulf %88, %88 : vector<8x32xf32>
    %cst_42 = arith.constant dense<0.000000e+00> : vector<8xf32>
    %90 = vector.multi_reduction <add>, %89, %cst_42 [1] : vector<8x32xf32> to vector<8xf32>
    %91 = vector.shape_cast %90 : vector<8xf32> to vector<8x1xf32>
    %cst_43 = arith.constant 3.200000e+01 : f32
    %92 = vector.broadcast %cst_43 : f32 to vector<8x1xf32>
    %93 = arith.divf %91, %92 : vector<8x1xf32>
    %94 = vector.broadcast %86 : vector<8x1xf32> to vector<8x32xf32>
    %95 = arith.subf %78, %94 : vector<8x32xf32>
    %cst_44 = arith.constant 9.99999997E-7 : f32
    %96 = vector.broadcast %cst_44 : f32 to vector<8x1xf32>
    %97 = arith.addf %93, %96 : vector<8x1xf32>
    %98 = math.rsqrt %97 : vector<8x1xf32>
    %99 = vector.broadcast %98 : vector<8x1xf32> to vector<8x32xf32>
    %100 = arith.mulf %95, %99 : vector<8x32xf32>
    %101 = vector.broadcast %80 : vector<1x32xf32> to vector<8x32xf32>
    %102 = arith.mulf %100, %101 : vector<8x32xf32>
    %103 = vector.broadcast %82 : vector<1x32xf32> to vector<8x32xf32>
    %104 = arith.addf %102, %103 : vector<8x32xf32>
    %105 = arith.truncf %104 : vector<8x32xf32> to vector<8x32xbf16>
    %c0_45 = arith.constant 0 : index
    %c0_46 = arith.constant 0 : index
    %c0_47 = arith.constant 0 : index
    %106 = vector.load %arg10[%c0_45, %c0_46, %c0_47] : memref<2x32x64xbf16, #tpu.memory_space<vmem>>, vector<1x32x64xbf16>
    %107 = vector.shape_cast %106 : vector<1x32x64xbf16> to vector<32x64xbf16>
    %cst_48 = arith.constant dense<0.000000e+00> : vector<8x64xf32>
    %108 = tpu.matmul %105, %107, %cst_48 {dimension_numbers = #tpu.dot_dimension_numbers<[1], [0], [0], [1], [0, 0, 1, 1], [], []>} : vector<8x32xbf16>, vector<32x64xbf16>, vector<8x64xf32> -> vector<8x64xf32>
    %c0_49 = arith.constant 0 : index
    %c0_50 = arith.constant 0 : index
    %c0_51 = arith.constant 0 : index
    %109 = vector.load %arg11[%c0_49, %c0_50, %c0_51] : memref<2x1x64xf32, #tpu.memory_space<vmem>>, vector<1x1x64xf32>
    %110 = vector.shape_cast %109 : vector<1x1x64xf32> to vector<1x64xf32>
    %111 = vector.broadcast %110 : vector<1x64xf32> to vector<8x64xf32>
    %112 = arith.addf %108, %111 : vector<8x64xf32>
    %cst_52 = arith.constant 5.000000e-01 : f32
    %113 = vector.broadcast %cst_52 : f32 to vector<8x64xf32>
    %114 = arith.mulf %113, %112 : vector<8x64xf32>
    %cst_53 = arith.constant 4.471500e-02 : f32
    %115 = vector.broadcast %cst_53 : f32 to vector<8x64xf32>
    %116 = arith.mulf %115, %112 : vector<8x64xf32>
    %117 = arith.mulf %116, %112 : vector<8x64xf32>
    %118 = arith.mulf %117, %112 : vector<8x64xf32>
    %119 = arith.addf %112, %118 : vector<8x64xf32>
    %cst_54 = arith.constant 0.797884583 : f32
    %120 = vector.broadcast %cst_54 : f32 to vector<8x64xf32>
    %121 = arith.mulf %120, %119 : vector<8x64xf32>
    %122 = math.tanh %121 : vector<8x64xf32>
    %cst_55 = arith.constant 1.000000e+00 : f32
    %123 = vector.broadcast %cst_55 : f32 to vector<8x64xf32>
    %124 = arith.addf %123, %122 : vector<8x64xf32>
    %125 = arith.mulf %114, %124 : vector<8x64xf32>
    %126 = arith.truncf %125 : vector<8x64xf32> to vector<8x64xbf16>
    %c0_56 = arith.constant 0 : index
    %c0_57 = arith.constant 0 : index
    %c0_58 = arith.constant 0 : index
    %127 = vector.load %arg12[%c0_56, %c0_57, %c0_58] : memref<2x64x32xbf16, #tpu.memory_space<vmem>>, vector<1x64x32xbf16>
    %128 = vector.shape_cast %127 : vector<1x64x32xbf16> to vector<64x32xbf16>
    %cst_59 = arith.constant dense<0.000000e+00> : vector<8x32xf32>
    %129 = tpu.matmul %126, %128, %cst_59 {dimension_numbers = #tpu.dot_dimension_numbers<[1], [0], [0], [1], [0, 0, 1, 1], [], []>} : vector<8x64xbf16>, vector<64x32xbf16>, vector<8x32xf32> -> vector<8x32xf32>
    %c0_60 = arith.constant 0 : index
    %c0_61 = arith.constant 0 : index
    %c0_62 = arith.constant 0 : index
    %130 = vector.load %arg13[%c0_60, %c0_61, %c0_62] : memref<2x1x32xf32, #tpu.memory_space<vmem>>, vector<1x1x32xf32>
    %131 = vector.shape_cast %130 : vector<1x1x32xf32> to vector<1x32xf32>
    %132 = vector.broadcast %131 : vector<1x32xf32> to vector<8x32xf32>
    %133 = arith.addf %129, %132 : vector<8x32xf32>
    %134 = arith.addf %78, %133 : vector<8x32xf32>
    %c1 = arith.constant 1 : index
    %c0_63 = arith.constant 0 : index
    %c0_64 = arith.constant 0 : index
    %135 = vector.load %arg2[%c1, %c0_63, %c0_64] : memref<2x1x32xf32, #tpu.memory_space<vmem>>, vector<1x1x32xf32>
    %136 = vector.shape_cast %135 : vector<1x1x32xf32> to vector<1x32xf32>
    %c1_65 = arith.constant 1 : index
    %c0_66 = arith.constant 0 : index
    %c0_67 = arith.constant 0 : index
    %137 = vector.load %arg3[%c1_65, %c0_66, %c0_67] : memref<2x1x32xf32, #tpu.memory_space<vmem>>, vector<1x1x32xf32>
    %138 = vector.shape_cast %137 : vector<1x1x32xf32> to vector<1x32xf32>
    %cst_68 = arith.constant dense<0.000000e+00> : vector<8xf32>
    %139 = vector.multi_reduction <add>, %134, %cst_68 [1] : vector<8x32xf32> to vector<8xf32>
    %140 = vector.shape_cast %139 : vector<8xf32> to vector<8x1xf32>
    %cst_69 = arith.constant 3.200000e+01 : f32
    %141 = vector.broadcast %cst_69 : f32 to vector<8x1xf32>
    %142 = arith.divf %140, %141 : vector<8x1xf32>
    %143 = vector.broadcast %142 : vector<8x1xf32> to vector<8x32xf32>
    %144 = arith.subf %134, %143 : vector<8x32xf32>
    %145 = arith.mulf %144, %144 : vector<8x32xf32>
    %cst_70 = arith.constant dense<0.000000e+00> : vector<8xf32>
    %146 = vector.multi_reduction <add>, %145, %cst_70 [1] : vector<8x32xf32> to vector<8xf32>
    %147 = vector.shape_cast %146 : vector<8xf32> to vector<8x1xf32>
    %cst_71 = arith.constant 3.200000e+01 : f32
    %148 = vector.broadcast %cst_71 : f32 to vector<8x1xf32>
    %149 = arith.divf %147, %148 : vector<8x1xf32>
    %150 = vector.broadcast %142 : vector<8x1xf32> to vector<8x32xf32>
    %151 = arith.subf %134, %150 : vector<8x32xf32>
    %cst_72 = arith.constant 9.99999997E-7 : f32
    %152 = vector.broadcast %cst_72 : f32 to vector<8x1xf32>
    %153 = arith.addf %149, %152 : vector<8x1xf32>
    %154 = math.rsqrt %153 : vector<8x1xf32>
    %155 = vector.broadcast %154 : vector<8x1xf32> to vector<8x32xf32>
    %156 = arith.mulf %151, %155 : vector<8x32xf32>
    %157 = vector.broadcast %136 : vector<1x32xf32> to vector<8x32xf32>
    %158 = arith.mulf %156, %157 : vector<8x32xf32>
    %159 = vector.broadcast %138 : vector<1x32xf32> to vector<8x32xf32>
    %160 = arith.addf %158, %159 : vector<8x32xf32>
    %161 = arith.truncf %160 : vector<8x32xf32> to vector<8x32xbf16>
    %162 = vector.shape_cast %161 : vector<8x32xbf16> to vector<1x8x32xbf16>
    %163 = vector.broadcast %162 : vector<1x8x32xbf16> to vector<12x8x32xbf16>
    %c1_73 = arith.constant 1 : index
    %c0_74 = arith.constant 0 : index
    %c0_75 = arith.constant 0 : index
    %c0_76 = arith.constant 0 : index
    %164 = vector.load %arg4[%c1_73, %c0_74, %c0_75, %c0_76] : memref<2x12x32x8xbf16, #tpu.memory_space<vmem>>, vector<1x12x32x8xbf16>
    %165 = vector.shape_cast %164 : vector<1x12x32x8xbf16> to vector<12x32x8xbf16>
    "tpu.trace_start"() <{level = 10 : i32, message = "nsd,ndk->nsk"}> : () -> ()
    %cst_77 = arith.constant dense<0.000000e+00> : vector<12x8x8xf32>
    %166 = tpu.matmul %163, %165, %cst_77 {dimension_numbers = #tpu.dot_dimension_numbers<[2], [1], [1], [2], [0, 0, 0, 1, 1, 2], [0], [0]>} : vector<12x8x32xbf16>, vector<12x32x8xbf16>, vector<12x8x8xf32> -> vector<12x8x8xf32>
    "tpu.trace_stop"() : () -> ()
    %c1_78 = arith.constant 1 : index
    %c0_79 = arith.constant 0 : index
    %c0_80 = arith.constant 0 : index
    %c0_81 = arith.constant 0 : index
    %167 = vector.load %arg5[%c1_78, %c0_79, %c0_80, %c0_81] : memref<2x12x1x8xf32, #tpu.memory_space<vmem>>, vector<1x12x1x8xf32>
    %168 = vector.shape_cast %167 : vector<1x12x1x8xf32> to vector<12x1x8xf32>
    %169 = vector.broadcast %168 : vector<12x1x8xf32> to vector<12x8x8xf32>
    %170 = arith.addf %166, %169 : vector<12x8x8xf32>
    %171 = vector.extract_strided_slice %170 {offsets = [0, 0, 0], sizes = [4, 8, 8], strides = [1, 1, 1]} : vector<12x8x8xf32> to vector<4x8x8xf32>
    %cst_82 = arith.constant 0.353553385 : f32
    %172 = vector.broadcast %cst_82 : f32 to vector<4x8x8xf32>
    %173 = arith.mulf %171, %172 : vector<4x8x8xf32>
    %174 = arith.truncf %173 : vector<4x8x8xf32> to vector<4x8x8xbf16>
    %175 = vector.extract_strided_slice %170 {offsets = [4, 0, 0], sizes = [4, 8, 8], strides = [1, 1, 1]} : vector<12x8x8xf32> to vector<4x8x8xf32>
    %176 = arith.truncf %175 : vector<4x8x8xf32> to vector<4x8x8xbf16>
    %177 = vector.extract_strided_slice %170 {offsets = [8, 0, 0], sizes = [4, 8, 8], strides = [1, 1, 1]} : vector<12x8x8xf32> to vector<4x8x8xf32>
    %178 = arith.truncf %177 : vector<4x8x8xf32> to vector<4x8x8xbf16>
    "tpu.trace_start"() <{level = 10 : i32, message = "hqd,hkd->hqk"}> : () -> ()
    %cst_83 = arith.constant dense<0.000000e+00> : vector<4x8x8xf32>
    %179 = tpu.matmul %174, %176, %cst_83 {dimension_numbers = #tpu.dot_dimension_numbers<[2], [2], [1], [1], [0, 0, 0, 1, 1, 1], [0], [0]>} : vector<4x8x8xbf16>, vector<4x8x8xbf16>, vector<4x8x8xf32> -> vector<4x8x8xf32>
    "tpu.trace_stop"() : () -> ()
    %cst_84 = arith.constant dense<0xFF800000> : vector<4x8xf32>
    %180 = vector.multi_reduction <maximumf>, %179, %cst_84 [2] : vector<4x8x8xf32> to vector<4x8xf32>
    %181 = vector.shape_cast %180 : vector<4x8xf32> to vector<4x8x1xf32>
    %182 = vector.broadcast %181 : vector<4x8x1xf32> to vector<4x8x8xf32>
    %183 = arith.subf %179, %182 : vector<4x8x8xf32>
    %184 = math.exp %183 : vector<4x8x8xf32>
    %cst_85 = arith.constant dense<0.000000e+00> : vector<4x8xf32>
    %185 = vector.multi_reduction <add>, %184, %cst_85 [2] : vector<4x8x8xf32> to vector<4x8xf32>
    %186 = vector.shape_cast %185 : vector<4x8xf32> to vector<4x8x1xf32>
    %187 = tpu.reciprocal %186 {approx = true} : vector<4x8x1xf32> -> vector<4x8x1xf32>
    %188 = vector.broadcast %187 : vector<4x8x1xf32> to vector<4x8x8xf32>
    %189 = arith.mulf %184, %188 : vector<4x8x8xf32>
    %190 = arith.truncf %189 : vector<4x8x8xf32> to vector<4x8x8xbf16>
    "tpu.trace_start"() <{level = 10 : i32, message = "hqk,hkd->hqd"}> : () -> ()
    %cst_86 = arith.constant dense<0.000000e+00> : vector<4x8x8xf32>
    %191 = tpu.matmul %190, %178, %cst_86 {dimension_numbers = #tpu.dot_dimension_numbers<[2], [1], [1], [2], [0, 0, 0, 1, 1, 2], [0], [0]>} : vector<4x8x8xbf16>, vector<4x8x8xbf16>, vector<4x8x8xf32> -> vector<4x8x8xf32>
    "tpu.trace_stop"() : () -> ()
    %192 = arith.truncf %191 : vector<4x8x8xf32> to vector<4x8x8xbf16>
    %c1_87 = arith.constant 1 : index
    %c0_88 = arith.constant 0 : index
    %c0_89 = arith.constant 0 : index
    %c0_90 = arith.constant 0 : index
    %193 = vector.load %arg6[%c1_87, %c0_88, %c0_89, %c0_90] : memref<2x4x8x32xbf16, #tpu.memory_space<vmem>>, vector<1x4x8x32xbf16>
    %194 = vector.shape_cast %193 : vector<1x4x8x32xbf16> to vector<4x8x32xbf16>
    "tpu.trace_start"() <{level = 10 : i32, message = "hsd,hde->hse"}> : () -> ()
    %cst_91 = arith.constant dense<0.000000e+00> : vector<4x8x32xf32>
    %195 = tpu.matmul %192, %194, %cst_91 {dimension_numbers = #tpu.dot_dimension_numbers<[2], [1], [1], [2], [0, 0, 0, 1, 1, 2], [0], [0]>} : vector<4x8x8xbf16>, vector<4x8x32xbf16>, vector<4x8x32xf32> -> vector<4x8x32xf32>
    "tpu.trace_stop"() : () -> ()
    %196 = vector.extract_strided_slice %195 {offsets = [0, 0, 0], sizes = [1, 8, 32], strides = [1, 1, 1]} : vector<4x8x32xf32> to vector<1x8x32xf32>
    %197 = vector.shape_cast %196 : vector<1x8x32xf32> to vector<8x32xf32>
    %198 = vector.extract_strided_slice %195 {offsets = [1, 0, 0], sizes = [1, 8, 32], strides = [1, 1, 1]} : vector<4x8x32xf32> to vector<1x8x32xf32>
    %199 = vector.shape_cast %198 : vector<1x8x32xf32> to vector<8x32xf32>
    %200 = arith.addf %197, %199 : vector<8x32xf32>
    %201 = vector.extract_strided_slice %195 {offsets = [2, 0, 0], sizes = [1, 8, 32], strides = [1, 1, 1]} : vector<4x8x32xf32> to vector<1x8x32xf32>
    %202 = vector.shape_cast %201 : vector<1x8x32xf32> to vector<8x32xf32>
    %203 = arith.addf %200, %202 : vector<8x32xf32>
    %204 = vector.extract_strided_slice %195 {offsets = [3, 0, 0], sizes = [1, 8, 32], strides = [1, 1, 1]} : vector<4x8x32xf32> to vector<1x8x32xf32>
    %205 = vector.shape_cast %204 : vector<1x8x32xf32> to vector<8x32xf32>
    %206 = arith.addf %203, %205 : vector<8x32xf32>
    %c1_92 = arith.constant 1 : index
    %c0_93 = arith.constant 0 : index
    %c0_94 = arith.constant 0 : index
    %207 = vector.load %arg7[%c1_92, %c0_93, %c0_94] : memref<2x1x32xf32, #tpu.memory_space<vmem>>, vector<1x1x32xf32>
    %208 = vector.shape_cast %207 : vector<1x1x32xf32> to vector<1x32xf32>
    %209 = vector.broadcast %208 : vector<1x32xf32> to vector<8x32xf32>
    %210 = arith.addf %206, %209 : vector<8x32xf32>
    %211 = arith.addf %134, %210 : vector<8x32xf32>
    %c1_95 = arith.constant 1 : index
    %c0_96 = arith.constant 0 : index
    %c0_97 = arith.constant 0 : index
    %212 = vector.load %arg8[%c1_95, %c0_96, %c0_97] : memref<2x1x32xf32, #tpu.memory_space<vmem>>, vector<1x1x32xf32>
    %213 = vector.shape_cast %212 : vector<1x1x32xf32> to vector<1x32xf32>
    %c1_98 = arith.constant 1 : index
    %c0_99 = arith.constant 0 : index
    %c0_100 = arith.constant 0 : index
    %214 = vector.load %arg9[%c1_98, %c0_99, %c0_100] : memref<2x1x32xf32, #tpu.memory_space<vmem>>, vector<1x1x32xf32>
    %215 = vector.shape_cast %214 : vector<1x1x32xf32> to vector<1x32xf32>
    %cst_101 = arith.constant dense<0.000000e+00> : vector<8xf32>
    %216 = vector.multi_reduction <add>, %211, %cst_101 [1] : vector<8x32xf32> to vector<8xf32>
    %217 = vector.shape_cast %216 : vector<8xf32> to vector<8x1xf32>
    %cst_102 = arith.constant 3.200000e+01 : f32
    %218 = vector.broadcast %cst_102 : f32 to vector<8x1xf32>
    %219 = arith.divf %217, %218 : vector<8x1xf32>
    %220 = vector.broadcast %219 : vector<8x1xf32> to vector<8x32xf32>
    %221 = arith.subf %211, %220 : vector<8x32xf32>
    %222 = arith.mulf %221, %221 : vector<8x32xf32>
    %cst_103 = arith.constant dense<0.000000e+00> : vector<8xf32>
    %223 = vector.multi_reduction <add>, %222, %cst_103 [1] : vector<8x32xf32> to vector<8xf32>
    %224 = vector.shape_cast %223 : vector<8xf32> to vector<8x1xf32>
    %cst_104 = arith.constant 3.200000e+01 : f32
    %225 = vector.broadcast %cst_104 : f32 to vector<8x1xf32>
    %226 = arith.divf %224, %225 : vector<8x1xf32>
    %227 = vector.broadcast %219 : vector<8x1xf32> to vector<8x32xf32>
    %228 = arith.subf %211, %227 : vector<8x32xf32>
    %cst_105 = arith.constant 9.99999997E-7 : f32
    %229 = vector.broadcast %cst_105 : f32 to vector<8x1xf32>
    %230 = arith.addf %226, %229 : vector<8x1xf32>
    %231 = math.rsqrt %230 : vector<8x1xf32>
    %232 = vector.broadcast %231 : vector<8x1xf32> to vector<8x32xf32>
    %233 = arith.mulf %228, %232 : vector<8x32xf32>
    %234 = vector.broadcast %213 : vector<1x32xf32> to vector<8x32xf32>
    %235 = arith.mulf %233, %234 : vector<8x32xf32>
    %236 = vector.broadcast %215 : vector<1x32xf32> to vector<8x32xf32>
    %237 = arith.addf %235, %236 : vector<8x32xf32>
    %238 = arith.truncf %237 : vector<8x32xf32> to vector<8x32xbf16>
    %c1_106 = arith.constant 1 : index
    %c0_107 = arith.constant 0 : index
    %c0_108 = arith.constant 0 : index
    %239 = vector.load %arg10[%c1_106, %c0_107, %c0_108] : memref<2x32x64xbf16, #tpu.memory_space<vmem>>, vector<1x32x64xbf16>
    %240 = vector.shape_cast %239 : vector<1x32x64xbf16> to vector<32x64xbf16>
    %cst_109 = arith.constant dense<0.000000e+00> : vector<8x64xf32>
    %241 = tpu.matmul %238, %240, %cst_109 {dimension_numbers = #tpu.dot_dimension_numbers<[1], [0], [0], [1], [0, 0, 1, 1], [], []>} : vector<8x32xbf16>, vector<32x64xbf16>, vector<8x64xf32> -> vector<8x64xf32>
    %c1_110 = arith.constant 1 : index
    %c0_111 = arith.constant 0 : index
    %c0_112 = arith.constant 0 : index
    %242 = vector.load %arg11[%c1_110, %c0_111, %c0_112] : memref<2x1x64xf32, #tpu.memory_space<vmem>>, vector<1x1x64xf32>
    %243 = vector.shape_cast %242 : vector<1x1x64xf32> to vector<1x64xf32>
    %244 = vector.broadcast %243 : vector<1x64xf32> to vector<8x64xf32>
    %245 = arith.addf %241, %244 : vector<8x64xf32>
    %cst_113 = arith.constant 5.000000e-01 : f32
    %246 = vector.broadcast %cst_113 : f32 to vector<8x64xf32>
    %247 = arith.mulf %246, %245 : vector<8x64xf32>
    %cst_114 = arith.constant 4.471500e-02 : f32
    %248 = vector.broadcast %cst_114 : f32 to vector<8x64xf32>
    %249 = arith.mulf %248, %245 : vector<8x64xf32>
    %250 = arith.mulf %249, %245 : vector<8x64xf32>
    %251 = arith.mulf %250, %245 : vector<8x64xf32>
    %252 = arith.addf %245, %251 : vector<8x64xf32>
    %cst_115 = arith.constant 0.797884583 : f32
    %253 = vector.broadcast %cst_115 : f32 to vector<8x64xf32>
    %254 = arith.mulf %253, %252 : vector<8x64xf32>
    %255 = math.tanh %254 : vector<8x64xf32>
    %cst_116 = arith.constant 1.000000e+00 : f32
    %256 = vector.broadcast %cst_116 : f32 to vector<8x64xf32>
    %257 = arith.addf %256, %255 : vector<8x64xf32>
    %258 = arith.mulf %247, %257 : vector<8x64xf32>
    %259 = arith.truncf %258 : vector<8x64xf32> to vector<8x64xbf16>
    %c1_117 = arith.constant 1 : index
    %c0_118 = arith.constant 0 : index
    %c0_119 = arith.constant 0 : index
    %260 = vector.load %arg12[%c1_117, %c0_118, %c0_119] : memref<2x64x32xbf16, #tpu.memory_space<vmem>>, vector<1x64x32xbf16>
    %261 = vector.shape_cast %260 : vector<1x64x32xbf16> to vector<64x32xbf16>
    %cst_120 = arith.constant dense<0.000000e+00> : vector<8x32xf32>
    %262 = tpu.matmul %259, %261, %cst_120 {dimension_numbers = #tpu.dot_dimension_numbers<[1], [0], [0], [1], [0, 0, 1, 1], [], []>} : vector<8x64xbf16>, vector<64x32xbf16>, vector<8x32xf32> -> vector<8x32xf32>
    %c1_121 = arith.constant 1 : index
    %c0_122 = arith.constant 0 : index
    %c0_123 = arith.constant 0 : index
    %263 = vector.load %arg13[%c1_121, %c0_122, %c0_123] : memref<2x1x32xf32, #tpu.memory_space<vmem>>, vector<1x1x32xf32>
    %264 = vector.shape_cast %263 : vector<1x1x32xf32> to vector<1x32xf32>
    %265 = vector.broadcast %264 : vector<1x32xf32> to vector<8x32xf32>
    %266 = arith.addf %262, %265 : vector<8x32xf32>
    %267 = arith.addf %211, %266 : vector<8x32xf32>
    %c0_124 = arith.constant 0 : index
    %c0_125 = arith.constant 0 : index
    %268 = vector.load %arg14[%c0_124, %c0_125] : memref<1x32xf32, #tpu.memory_space<vmem>>, vector<1x32xf32>
    %c0_126 = arith.constant 0 : index
    %c0_127 = arith.constant 0 : index
    %269 = vector.load %arg15[%c0_126, %c0_127] : memref<1x32xf32, #tpu.memory_space<vmem>>, vector<1x32xf32>
    %cst_128 = arith.constant dense<0.000000e+00> : vector<8xf32>
    %270 = vector.multi_reduction <add>, %267, %cst_128 [1] : vector<8x32xf32> to vector<8xf32>
    %271 = vector.shape_cast %270 : vector<8xf32> to vector<8x1xf32>
    %cst_129 = arith.constant 3.200000e+01 : f32
    %272 = vector.broadcast %cst_129 : f32 to vector<8x1xf32>
    %273 = arith.divf %271, %272 : vector<8x1xf32>
    %274 = vector.broadcast %273 : vector<8x1xf32> to vector<8x32xf32>
    %275 = arith.subf %267, %274 : vector<8x32xf32>
    %276 = arith.mulf %275, %275 : vector<8x32xf32>
    %cst_130 = arith.constant dense<0.000000e+00> : vector<8xf32>
    %277 = vector.multi_reduction <add>, %276, %cst_130 [1] : vector<8x32xf32> to vector<8xf32>
    %278 = vector.shape_cast %277 : vector<8xf32> to vector<8x1xf32>
    %cst_131 = arith.constant 3.200000e+01 : f32
    %279 = vector.broadcast %cst_131 : f32 to vector<8x1xf32>
    %280 = arith.divf %278, %279 : vector<8x1xf32>
    %281 = vector.broadcast %273 : vector<8x1xf32> to vector<8x32xf32>
    %282 = arith.subf %267, %281 : vector<8x32xf32>
    %cst_132 = arith.constant 9.99999997E-7 : f32
    %283 = vector.broadcast %cst_132 : f32 to vector<8x1xf32>
    %284 = arith.addf %280, %283 : vector<8x1xf32>
    %285 = math.rsqrt %284 : vector<8x1xf32>
    %286 = vector.broadcast %285 : vector<8x1xf32> to vector<8x32xf32>
    %287 = arith.mulf %282, %286 : vector<8x32xf32>
    %288 = vector.broadcast %268 : vector<1x32xf32> to vector<8x32xf32>
    %289 = arith.mulf %287, %288 : vector<8x32xf32>
    %290 = vector.broadcast %269 : vector<1x32xf32> to vector<8x32xf32>
    %291 = arith.addf %289, %290 : vector<8x32xf32>
    %c0_133 = arith.constant 0 : index
    %c0_134 = arith.constant 0 : index
    %c0_135 = arith.constant 0 : index
    %292 = vector.load %arg16[%c0_133, %c0_134, %c0_135] : memref<1x8x32xf32, #tpu.memory_space<vmem>>, vector<1x8x32xf32>
    %293 = vector.shape_cast %292 : vector<1x8x32xf32> to vector<8x32xf32>
    %294 = vector.shape_cast %291 : vector<8x32xf32> to vector<1x8x32xf32>
    tpu.vector_store %arg16[%c0_133, %c0_134, %c0_135], %294 {strides = array<i32>} : memref<1x8x32xf32, #tpu.memory_space<vmem>>, vector<1x8x32xf32>,
    return
  }
  func.func @transform_0(%arg0: i32) -> (i32, i32, i32) {
    %c0_i32 = arith.constant 0 : i32
    %c0_i32_0 = arith.constant 0 : i32
    %c0_i32_1 = arith.constant 0 : i32
    return %arg0, %c0_i32, %c0_i32_0 : i32, i32, i32
  }
  func.func @transform_1(%arg0: i32) -> (i32, i32, i32) {
    %c0_i32 = arith.constant 0 : i32
    %c0_i32_0 = arith.constant 0 : i32
    %c0_i32_1 = arith.constant 0 : i32
    %c0_i32_2 = arith.constant 0 : i32
    return %c0_i32, %c0_i32_0, %c0_i32_1 : i32, i32, i32
  }
  func.func @transform_2(%arg0: i32) -> (i32, i32, i32) {
    %c0_i32 = arith.constant 0 : i32
    %c0_i32_0 = arith.constant 0 : i32
    %c0_i32_1 = arith.constant 0 : i32
    %c0_i32_2 = arith.constant 0 : i32
    return %c0_i32, %c0_i32_0, %c0_i32_1 : i32, i32, i32
  }
  func.func @transform_3(%arg0: i32) -> (i32, i32, i32, i32) {
    %c0_i32 = arith.constant 0 : i32
    %c0_i32_0 = arith.constant 0 : i32
    %c0_i32_1 = arith.constant 0 : i32
    %c0_i32_2 = arith.constant 0 : i32
    %c0_i32_3 = arith.constant 0 : i32
    return %c0_i32, %c0_i32_0, %c0_i32_1, %c0_i32_2 : i32, i32, i32, i32
  }
  func.func @transform_4(%arg0: i32) -> (i32, i32, i32, i32) {
    %c0_i32 = arith.constant 0 : i32
    %c0_i32_0 = arith.constant 0 : i32
    %c0_i32_1 = arith.constant 0 : i32
    %c0_i32_2 = arith.constant 0 : i32
    %c0_i32_3 = arith.constant 0 : i32
    return %c0_i32, %c0_i32_0, %c0_i32_1, %c0_i32_2 : i32, i32, i32, i32
  }
  func.func @transform_5(%arg0: i32) -> (i32, i32, i32, i32) {
    %c0_i32 = arith.constant 0 : i32
    %c0_i32_0 = arith.constant 0 : i32
    %c0_i32_1 = arith.constant 0 : i32
    %c0_i32_2 = arith.constant 0 : i32
    %c0_i32_3 = arith.constant 0 : i32
    return %c0_i32, %c0_i32_0, %c0_i32_1, %c0_i32_2 : i32, i32, i32, i32
  }
  func.func @transform_6(%arg0: i32) -> (i32, i32, i32) {
    %c0_i32 = arith.constant 0 : i32
    %c0_i32_0 = arith.constant 0 : i32
    %c0_i32_1 = arith.constant 0 : i32
    %c0_i32_2 = arith.constant 0 : i32
    return %c0_i32, %c0_i32_0, %c0_i32_1 : i32, i32, i32
  }
  func.func @transform_7(%arg0: i32) -> (i32, i32, i32) {
    %c0_i32 = arith.constant 0 : i32
    %c0_i32_0 = arith.constant 0 : i32
    %c0_i32_1 = arith.constant 0 : i32
    %c0_i32_2 = arith.constant 0 : i32
    return %c0_i32, %c0_i32_0, %c0_i32_1 : i32, i32, i32
  }
  func.func @transform_8(%arg0: i32) -> (i32, i32, i32) {
    %c0_i32 = arith.constant 0 : i32
    %c0_i32_0 = arith.constant 0 : i32
    %c0_i32_1 = arith.constant 0 : i32
    %c0_i32_2 = arith.constant 0 : i32
    return %c0_i32, %c0_i32_0, %c0_i32_1 : i32, i32, i32
  }
  func.func @transform_9(%arg0: i32) -> (i32, i32, i32) {
    %c0_i32 = arith.constant 0 : i32
    %c0_i32_0 = arith.constant 0 : i32
    %c0_i32_1 = arith.constant 0 : i32
    %c0_i32_2 = arith.constant 0 : i32
    return %c0_i32, %c0_i32_0, %c0_i32_1 : i32, i32, i32
  }
  func.func @transform_10(%arg0: i32) -> (i32, i32, i32) {
    %c0_i32 = arith.constant 0 : i32
    %c0_i32_0 = arith.constant 0 : i32
    %c0_i32_1 = arith.constant 0 : i32
    %c0_i32_2 = arith.constant 0 : i32
    return %c0_i32, %c0_i32_0, %c0_i32_1 : i32, i32, i32
  }
  func.func @transform_11(%arg0: i32) -> (i32, i32, i32) {
    %c0_i32 = arith.constant 0 : i32
    %c0_i32_0 = arith.constant 0 : i32
    %c0_i32_1 = arith.constant 0 : i32
    %c0_i32_2 = arith.constant 0 : i32
    return %c0_i32, %c0_i32_0, %c0_i32_1 : i32, i32, i32
  }
  func.func @transform_12(%arg0: i32) -> (i32, i32, i32) {
    %c0_i32 = arith.constant 0 : i32
    %c0_i32_0 = arith.constant 0 : i32
    %c0_i32_1 = arith.constant 0 : i32
    %c0_i32_2 = arith.constant 0 : i32
    return %c0_i32, %c0_i32_0, %c0_i32_1 : i32, i32, i32
  }
  func.func @transform_13(%arg0: i32) -> (i32, i32) {
    %c0_i32 = arith.constant 0 : i32
    %c0_i32_0 = arith.constant 0 : i32
    %c0_i32_1 = arith.constant 0 : i32
    return %c0_i32, %c0_i32_0 : i32, i32
  }
  func.func @transform_14(%arg0: i32) -> (i32, i32) {
    %c0_i32 = arith.constant 0 : i32
    %c0_i32_0 = arith.constant 0 : i32
    %c0_i32_1 = arith.constant 0 : i32
    return %c0_i32, %c0_i32_0 : i32, i32
  }
  func.func @transform_15(%arg0: i32) -> (i32, i32, i32) {
    %c0_i32 = arith.constant 0 : i32
    %c0_i32_0 = arith.constant 0 : i32
    %c0_i32_1 = arith.constant 0 : i32
    return %arg0, %c0_i32, %c0_i32_0 : i32, i32, i32
  }
}

</mosaic_0001>

<bundles_post_ra>
// kernel: transformer_forward.1
= control target key start
LH: loop header
LB: loop body
LE: loop exit
PB: predicated region body
PF: predicated region fallthrough
CT: control target
= control target key end

     0   :  { %s5646_s0 = inlined_call_operand.vmem [shape: f32[2,8,32], index: 0, kind: input, shape index: {}]   ;;  %s5647_s1 = inlined_call_operand.vmem [shape: f32[2,1,32], index: 1, kind: input, shape index: {}]   ;;  %s5648_s2 = inlined_call_operand.vmem [shape: f32[2,1,32], index: 2, kind: input, shape index: {}]   ;;  %s5649_s3 = inlined_call_operand.vmem [shape: bf16[2,12,32,8], index: 3, kind: input, shape index: {}]   ;;  %s5650_s4 = inlined_call_operand.vmem [shape: f32[2,12,1,8], index: 4, kind: input, shape index: {}]   ;;  %s5651_s5 = inlined_call_operand.vmem [shape: bf16[2,4,8,32], index: 5, kind: input, shape index: {}]   ;;  %s5652_s6 = inlined_call_operand.vmem [shape: f32[2,1,32], index: 6, kind: input, shape index: {}]   ;;  %s5653_s7 = inlined_call_operand.vmem [shape: f32[2,1,32], index: 7, kind: input, shape index: {}]   ;;  %s5654_s8 = inlined_call_operand.vmem [shape: f32[2,1,32], index: 8, kind: input, shape index: {}]   ;;  %s5655_s9 = inlined_call_operand.vmem [shape: bf16[2,32,64], index: 9, kind: input, shape index: {}]   ;;  %s5656_s10 = inlined_call_operand.vmem [shape: f32[2,1,64], index: 10, kind: input, shape index: {}]   ;;  %s5657_s11 = inlined_call_operand.vmem [shape: bf16[2,64,32], index: 11, kind: input, shape index: {}]   ;;  %s5658_s12 = inlined_call_operand.vmem [shape: f32[2,1,32], index: 12, kind: input, shape index: {}]   ;;  %s5659_s13 = inlined_call_operand.vmem [shape: f32[1,32], index: 13, kind: input, shape index: {}]   ;;  %s5660_s14 = inlined_call_operand.vmem [shape: f32[1,32], index: 14, kind: input, shape index: {}]   ;;  %s5661_s15 = inlined_call_operand.hbm [shape: f32[2,8,32], index: 15, kind: output, shape index: {}]  }
   0x1   :  { %5662 = sst [smem:[#allocation6_spill]] %s5646_s0 }
   0x2   :  { %5663 = sst [smem:[#allocation7_spill]] %s5647_s1 }
   0x3   :  { %5664 = sst [smem:[#allocation8_spill]] %s5648_s2 }
   0x4   :  { %5665 = sst [smem:[#allocation9_spill]] %s5649_s3 }
   0x5   :  { %5666 = sst [smem:[#allocation10_spill]] %s5650_s4 }
   0x6   :  { %5667 = sst [smem:[#allocation11_spill]] %s5651_s5 }
   0x7   :  { %20 = vsyncpa [#allocation3], 0 }
   0x8   :  { %22 = vsyncpa [#allocation3 + $0x1], 0  ;;  %s4889_s18 = smov 0   ;;  %s4891_s19 = smov 0  }
   0x9   :  { %s4893_s20 = smov 0   ;;  %s4895_s21 = smov 0  }
   0xa LB: > { %s4910_s22 = sadd.s32 4294967295, %s4804_s21   ;;  %s3840_s23 = sadd.s32 4294967294, %s4804_s21   ;;  %s4804_s21 = sphi %s4895_s21, %s5681_s21   ;;  %s4800_s20 = sphi %s4893_s20, %s5680_s20   ;;  %s4796_s19 = sphi %s4891_s19, %s5679_s19   ;;  %s4792_s18 = sphi %s4889_s18, %s5678_s18  }
   0xb   : > { %s4914_s24 = sadd.s32 1, %s4804_s21   ;;  %s355_s25 = sadd.s32 1, %s4800_s20 }
   0xc   : > { %s352_s26 = ssub.s32 %s4804_s21, %s4914_s24  ;;  %p365_p0 = scmp.ne.s32.totalorder %s4800_s20, %s4796_s19 }
   0xd   : > { %p353_p1 = scmp.eq.s32.totalorder %s352_s26, 0  ;;  %p366_p2 = scmp.eq.s32.totalorder %s4910_s22, 1 }
   0xe   : > { %p371_p3 = scmp.ne.s32.totalorder %s4796_s19, %s4792_s18  ;;  %p372_p4 = scmp.eq.s32.totalorder %s3840_s23, 1 }
   0xf   : > { %s4925_s27 = scalar_select %p353_p1, %s4800_s20, %s355_s25  }
  0x10   : > { %p4927_p5 = por %p366_p2, %p365_p0  ;;  %p4931_p6 = por %p372_p4, %p371_p3 }
  0x11   : > { %5668 = sst [smem:[#allocation5_spill]] %s4925_s27  ;;  %p3843_p7 = scmp.ge.s32.totalorder %s4804_s21, 1 }
  0x12   : > { %p439_p8 = scmp.lt.s32.totalorder %s4804_s21, 3 }
  0x14   : > { %p440_p9 = pnand %p3843_p7, %p439_p8 }
  0x15   : > { %p486_p10 = scmp.lt.s32.totalorder (!%p440_p9), %s4910_s22, 1  ;;  %s5671_s0 = sld [smem:[#allocation6_spill]] (!%p440_p9) }
  0x16   : > { %443 = sbr.rel (%p440_p9) target bundleno = 4713 (0x1269), region = 80  ;;  %s5672_s3 = sld [smem:[#allocation9_spill]] (!%p440_p9) }
  0x17   : > { %s5673_s1 = sld [smem:[#allocation7_spill]] (!%p440_p9)  ;;  %s4082_s23 = sshll.u32 (!%p440_p9), %s4910_s22, 7 }
  0x18   : > { %s5674_s2 = sld [smem:[#allocation8_spill]] (!%p440_p9) }
  0x19   : > { %s5675_s4 = sld [smem:[#allocation10_spill]] (!%p440_p9) }
  0x1a   : > { %s5676_s5 = sld [smem:[#allocation11_spill]] (!%p440_p9) }
  0x1b   : > { %s487_s30 = scalar_select %p486_p10, %s4910_s22, 1  ;;  %vm494_vm0 = vcmask 261120   ;;  %v4806_v9 = vmov 0.0   ;;  %vm4807_vm1 = vmmov 0   ;;  %vm1299_vm2 = vcmask 64512  }
  0x1c   : > { %v4638_v7 = vld [vmem:[%s5672_s3 + $0x8] sm:$0xff]   ;;  %4221 = vmatprep.subr.bf16.mxu1 %v4806_v9  ;;  %4237 = vmatprep.subr.bf16.mxu0 %v4806_v9  ;;  %v4640_v10 = vld [vmem:[%s5672_s3] sm:$0xff]   ;;  %v4642_v21 = vld [vmem:[%s5672_s3 + $0x18] sm:$0xff]   ;;  %vm1535_vm3 = vcmask 1043456   ;;  %vm2066_vm4 = vcmask 523264  }
  0x1d   : > { %s3845_s16 = sshll.u32 %s487_s30, 3  ;;  %v4639_v8 = vld [vmem:[%s5672_s3 + $0x28] sm:$0xff]   ;;  %4222 = vmatpush3.bf16.msra.mxu1 %v4638_v7  ;;  %v4641_v11 = vld [vmem:[%s5672_s3 + $0x20] sm:$0xff]   ;;  %4225 = vmatprep.mubr.msk.bf16.mxu1 %vm4807_vm1, %v4806_v9  ;;  %v4644_v24 = vld [vmem:[%s5672_s3 + $0x10] sm:$0xff]   ;;  %s4808_s30 = smov [#allocation2]  }
  0x1e   : > { %s489_s25 = scalar_lea.vmem %s5671_s0, %s3845_s16  ;;  %4238 = vmatpush3.bf16.msra.mxu0 %v4639_v8  ;;  %4223 = vmatprep.subr.bf16.mxu1 %v4806_v9  ;;  %v3846_v16 = vld [vmem:[%s5673_s1] ss:$0 sm:$0xff]  ;;  %v4643_v22 = vld [vmem:[%s5672_s3 + $0x48] sm:$0xff]   ;;  %v4646_v26 = vld [vmem:[%s5672_s3 + $0x38] sm:$0xff]   ;;  %s483_s0 = sand.u32 1, %s4796_s19  }
  0x1f   : > { %v4942_v0 = vld [vmem:[%s489_s25] sm:$0xff]  ;;  %4239 = vmatprep.subr.bf16.mxu0 %v4806_v9  ;;  %4241 = vmatprep.mubr.msk.bf16.mxu0 %vm4807_vm1, %v4806_v9  ;;  %v4647_v27 = vld [vmem:[%s5672_s3 + $0x68] sm:$0xff]   ;;  %v4648_v28 = vld [vmem:[%s5672_s3 + $0x30] sm:$0xff]   ;;  %s3844_s27 = sshll.u32 %s483_s0, 3  ;;  %s4748_s17 = sshll.u32 %s4808_s30, 4  ;;  %s4749_s17 = int_to_ptr.vmem [resolvable:$false] %s4748_s17 }
  0x20   : > { %v495_v1 = vsel %vm494_vm0, %v4942_v0, 0.0  ;;  %v3847_v18 = vld [vmem:[%s5674_s2] ss:$0 sm:$0xff]  ;;  %v4650_v30 = vld [vmem:[%s5672_s3 + $0x58] sm:$0xff]   ;;  %v4651_v31 = vld [vmem:[%s5672_s3 + $0x88] sm:$0xff]   ;;  %s485_s25 = scalar_lea.vmem [#allocation2], %s3844_s27 }
  0x21   : > { %496 = vadd.xlane.f32.xlu0 %v495_v1  ;;  %4224 = vmatpush3.bf16.msra.mxu1 %v4640_v10  ;;  %v4645_v25 = vld [vmem:[%s5672_s3 + $0x40] sm:$0xff]   ;;  %v4652_v32 = vld [vmem:[%s5672_s3 + $0x50] sm:$0xff]   ;;  %v4654_v34 = vld [vmem:[%s5672_s3 + $0x78] sm:$0xff]   ;;  %s4750_s22 = scalar_lea.vmem %s4749_s17, 256 }
  0x22   : > { %4240 = vmatpush3.bf16.msra.mxu0 %v4641_v11  ;;  %4229 = vmatprep.subr.bf16.mxu1 %v4806_v9  ;;  %v4649_v29 = vld [vmem:[%s5672_s3 + $0x60] sm:$0xff]   ;;  %v4655_v35 = vld [vmem:[%s5672_s3 + $0xa8] sm:$0xff]   ;;  %v4656_v36 = vld [vmem:[%s5672_s3 + $0x70] sm:$0xff]  }
  0x23   : > { %4253 = vmatprep.subr.bf16.mxu0 %v4806_v9  ;;  %v4653_v33 = vld [vmem:[%s5672_s3 + $0x80] sm:$0xff]   ;;  %v4658_v38 = vld [vmem:[%s5672_s3 + $0x98] sm:$0xff]   ;;  %v4659_v39 = vld [vmem:[%s5672_s3 + $0x90] sm:$0xff]  }
  0x24   : > { %v4657_v37 = vld [vmem:[%s5672_s3 + $0xa0] sm:$0xff]   ;;  %v4660_v40 = vld [vmem:[%s5672_s3 + $0xb8] sm:$0xff]   ;;  %v4661_v41 = vld [vmem:[%s5672_s3 + $0xb0] sm:$0xff]  }
  0x25   : > { %v3852_v50 = vld [vmem:[%s5675_s4 + $0x4] ss:$0 sm:$0xff]  ;;  %v3848_v51 = vld [vmem:[%s5675_s4] ss:$0 sm:$0xff]  ;;  %v3854_v1 = vld [vmem:[%s5675_s4 + $0x6] ss:$0 sm:$0xff] }
  0xaa   : > { %v497_v2 = vpop.xlane.xlu0 %496 }
  0xab   : > { %v499_v3 = vmul.f32 0.03125, %v497_v2 }
  0xad   : > { %v500_v4 = vsub.f32 %v4942_v0, %v499_v3  ;;  %v3850_v3 = vld [vmem:[%s5675_s4 + $0x2] ss:$0 sm:$0xff] }
  0xaf   : > { %v501_v5 = vmul.f32 %v500_v4, %v500_v4 }
  0xb1   : > { %v502_v6 = vsel %vm494_vm0, %v501_v5, 0.0 }
  0xb2   : > { %503 = vadd.xlane.f32.xlu0 %v502_v6 }
 0x13b   : > { %v504_v12 = vpop.xlane.xlu0 %503 }
 0x13c   : > { %v505_v13 = vmul.f32 0.03125, %v504_v12 }
 0x13e   : > { %v506_v14 = vadd.f32 1e-06, %v505_v13 }
 0x140   : > { %4698 = vrsqrt.f32 %v506_v14 }
 0x14d   : > { %v4699_v15 = vpop.eup %4698 }
 0x14e   : > { %v508_v17 = vmul.f32 %v4699_v15, %v500_v4 }
 0x150   : > { %v515_v19 = vmul.f32 %v3846_v16, %v508_v17 }
 0x152   : > { %v522_v20 = vadd.f32 %v3847_v18, %v515_v19  ;;  %v3853_v18 = vld [vmem:[%s5675_s4 + $0x5] ss:$0 sm:$0xff]  ;;  %v3856_v19 = vld [vmem:[%s5675_s4 + $0x8] ss:$0 sm:$0xff] }
 0x154   : > { %v4982_v23 = vpack.c.bf16 %v522_v20, %v522_v20 }
 0x156   : > { %4226 = vmatmul.mubr.msk.bf16.vlgmr.msra.gmra.mxu1 %vm494_vm0, %v4982_v23  ;;  %4242 = vmatmul.mubr.msk.bf16.vlgmr.msra.gmra.mxu0 %vm494_vm0, %v4982_v23 }
 0x157   : > { %4230 = vmatpush3.bf16.msra.mxu1 %v4642_v21  ;;  %4254 = vmatpush3.bf16.msra.mxu0 %v4643_v22  ;;  %v3849_v21 = vld [vmem:[%s5675_s4 + $0x1] ss:$0 sm:$0xff] }
 0x158   : > { %4231 = vmatprep.subr.bf16.mxu1 %v4806_v9  ;;  %4255 = vmatprep.subr.bf16.mxu0 %v4806_v9 }
 0x159   : > { %4233 = vmatprep.mubr.msk.bf16.mxu1 %vm4807_vm1, %v4806_v9  ;;  %4257 = vmatprep.mubr.msk.bf16.mxu0 %vm4807_vm1, %v4806_v9 }
 0x15b   : > { %4232 = vmatpush3.bf16.msra.mxu1 %v4644_v24  ;;  %4256 = vmatpush3.bf16.msra.mxu0 %v4645_v25 }
 0x15c   : > { %4245 = vmatprep.subr.bf16.mxu1 %v4806_v9  ;;  %4269 = vmatprep.subr.bf16.mxu0 %v4806_v9 }
 0x15e   : > { %4234 = vmatmul.mubr.msk.bf16.vlgmr.msra.gmra.mxu1 %vm494_vm0, %v4982_v23  ;;  %4258 = vmatmul.mubr.msk.bf16.vlgmr.msra.gmra.mxu0 %vm494_vm0, %v4982_v23 }
 0x15f   : > { %4246 = vmatpush3.bf16.msra.mxu1 %v4646_v26  ;;  %4270 = vmatpush3.bf16.msra.mxu0 %v4647_v27 }
 0x160   : > { %4247 = vmatprep.subr.bf16.mxu1 %v4806_v9  ;;  %4271 = vmatprep.subr.bf16.mxu0 %v4806_v9 }
 0x161   : > { %4249 = vmatprep.mubr.msk.bf16.mxu1 %vm4807_vm1, %v4806_v9  ;;  %4273 = vmatprep.mubr.msk.bf16.mxu0 %vm4807_vm1, %v4806_v9 }
 0x163   : > { %4248 = vmatpush3.bf16.msra.mxu1 %v4648_v28  ;;  %4272 = vmatpush3.bf16.msra.mxu0 %v4649_v29 }
 0x164   : > { %4261 = vmatprep.subr.bf16.mxu1 %v4806_v9  ;;  %4285 = vmatprep.subr.bf16.mxu0 %v4806_v9 }
 0x166   : > { %4250 = vmatmul.mubr.msk.bf16.vlgmr.msra.gmra.mxu1 %vm494_vm0, %v4982_v23  ;;  %4274 = vmatmul.mubr.msk.bf16.vlgmr.msra.gmra.mxu0 %vm494_vm0, %v4982_v23 }
 0x167   : > { %4262 = vmatpush3.bf16.msra.mxu1 %v4650_v30  ;;  %4286 = vmatpush3.bf16.msra.mxu0 %v4651_v31 }
 0x168   : > { %4263 = vmatprep.subr.bf16.mxu1 %v4806_v9  ;;  %4287 = vmatprep.subr.bf16.mxu0 %v4806_v9 }
 0x169   : > { %4265 = vmatprep.mubr.msk.bf16.mxu1 %vm4807_vm1, %v4806_v9  ;;  %4289 = vmatprep.mubr.msk.bf16.mxu0 %vm4807_vm1, %v4806_v9 }
 0x16b   : > { %4264 = vmatpush3.bf16.msra.mxu1 %v4652_v32  ;;  %4288 = vmatpush3.bf16.msra.mxu0 %v4653_v33 }
 0x16c   : > { %4277 = vmatprep.subr.bf16.mxu1 %v4806_v9  ;;  %4301 = vmatprep.subr.bf16.mxu0 %v4806_v9 }
 0x16e   : > { %4266 = vmatmul.mubr.msk.bf16.vlgmr.msra.gmra.mxu1 %vm494_vm0, %v4982_v23  ;;  %4290 = vmatmul.mubr.msk.bf16.vlgmr.msra.gmra.mxu0 %vm494_vm0, %v4982_v23 }
 0x16f   : > { %4278 = vmatpush3.bf16.msra.mxu1 %v4654_v34  ;;  %4302 = vmatpush3.bf16.msra.mxu0 %v4655_v35 }
 0x170   : > { %4279 = vmatprep.subr.bf16.mxu1 %v4806_v9  ;;  %4303 = vmatprep.subr.bf16.mxu0 %v4806_v9 }
 0x171   : > { %4281 = vmatprep.mubr.msk.bf16.mxu1 %vm4807_vm1, %v4806_v9  ;;  %4305 = vmatprep.mubr.msk.bf16.mxu0 %vm4807_vm1, %v4806_v9 }
 0x173   : > { %4280 = vmatpush3.bf16.msra.mxu1 %v4656_v36  ;;  %4304 = vmatpush3.bf16.msra.mxu0 %v4657_v37 }
 0x174   : > { %4293 = vmatprep.subr.bf16.mxu1 %v4806_v9  ;;  %4317 = vmatprep.subr.bf16.mxu0 %v4806_v9 }
 0x176   : > { %4282 = vmatmul.mubr.msk.bf16.vlgmr.msra.gmra.mxu1 %vm494_vm0, %v4982_v23  ;;  %4306 = vmatmul.mubr.msk.bf16.vlgmr.msra.gmra.mxu0 %vm494_vm0, %v4982_v23 }
 0x177   : > { %4294 = vmatpush3.bf16.msra.mxu1 %v4658_v38  ;;  %4297 = vmatprep.mubr.msk.bf16.mxu1 %vm4807_vm1, %v4806_v9  ;;  %v3855_v38 = vld [vmem:[%s5675_s4 + $0x7] ss:$0 sm:$0xff] }
 0x178   : > { %4295 = vmatprep.subr.bf16.mxu1 %v4806_v9  ;;  %4319 = vmatprep.mubr.msk.bf16.mxu0 %vm4807_vm1, %v4806_v9 }
 0x17b   : > { %4296 = vmatpush3.bf16.msra.mxu1 %v4659_v39 }
 0x17c   : > { %4309 = vmatprep.subr.bf16.mxu1 %v4806_v9 }
 0x17e   : > { %4298 = vmatmul.mubr.msk.bf16.vlgmr.msra.gmra.mxu1 %vm494_vm0, %v4982_v23 }
 0x17f   : > { %4310 = vmatpush3.bf16.msra.mxu1 %v4660_v40  ;;  %4313 = vmatprep.mubr.msk.bf16.mxu1 %vm4807_vm1, %v4806_v9  ;;  %v3851_v40 = vld [vmem:[%s5675_s4 + $0x3] ss:$0 sm:$0xff] }
 0x180   : > { %4311 = vmatprep.subr.bf16.mxu1 %v4806_v9 }
 0x183   : > { %4312 = vmatpush3.bf16.msra.mxu1 %v4661_v41 }
 0x184   : > { %4323 = vmatprep.subr.bf16.mxu1 %v4806_v9 }
 0x186   : > { %4314 = vmatmul.mubr.msk.bf16.vlgmr.msra.gmra.mxu1 %vm494_vm0, %v4982_v23 }
 0x187   : > { %4325 = vmatprep.mubr.msk.bf16.mxu1 %vm4807_vm1, %v4806_v9 }
 0x216   : > { %v705_v42 = vpop.f32.mrf.mxu1  ;;  %v809_v43 = vpop.f32.mrf.mxu0 }
 0x217   : > { %v706_v57 = vadd.f32 %v3848_v51, %v705_v42  ;;  %v810_v11 = vadd.f32 %v3850_v3, %v809_v43 }
 0x218   : > { %v4227_v44 = vpop.f32.mrf.mxu1  ;;  %v4243_v45 = vpop.f32.mrf.mxu0 }
 0x219   : > { %v1283_v2 = vmul.f32 0.35355338, %v706_v57  ;;  %v1285_v20 = vmul.f32 0.35355338, %v810_v11 }
 0x21a   : > { %v708_v46 = vpop.f32.mrf.mxu1  ;;  %v812_v47 = vpop.f32.mrf.mxu0 }
 0x21b   : > { %v1287_v10 = vpack.c.bf16 %v1283_v2, %v1283_v2  ;;  %v1289_v28 = vpack.c.bf16 %v1285_v20, %v1285_v20 }
 0x21c   : > { %v4228_v48 = vpop.f32.mrf.mxu1  ;;  %v4244_v49 = vpop.f32.mrf.mxu0 }
 0x21e   : > { %v757_v52 = vpop.f32.mrf.mxu1  ;;  %v913_v53 = vpop.f32.mrf.mxu0 }
 0x21f   : > { %v914_v54 = vadd.f32 %v3852_v50, %v913_v53  ;;  %v758_v29 = vadd.f32 %v3849_v21, %v757_v52 }
 0x220   : > { %v4235_v55 = vpop.f32.mrf.mxu1  ;;  %v4259_v56 = vpop.f32.mrf.mxu0 }
 0x221   : > { %v1291_v58 = vpack.c.bf16 %v914_v54, %v914_v54  ;;  %v1284_v39 = vmul.f32 0.35355338, %v758_v29  ;;  %v3857_v54 = vld [vmem:[%s5675_s4 + $0x9] ss:$0 sm:$0xff] }
 0x222   : > { %v760_v59 = vpop.f32.mrf.mxu1  ;;  %v916_v60 = vpop.f32.mrf.mxu0 }
 0x223   : > { %v1304_v61 = vsel %vm1299_vm2, %v1291_v58, 0  ;;  %v1288_v46 = vpack.c.bf16 %v1284_v39, %v1284_v39 }
 0x224   : > { %v4236_v62 = vpop.f32.mrf.mxu1  ;;  %v4260_v63 = vpop.f32.mrf.mxu0  ;;  %4318 = vmatpush3.bf16.xpose.msra.mxu0 %v1304_v61 }
 0x225   : > { %4329 = vmatprep.subr.bf16.mxu0 %v4806_v9 }
 0x226   : > { %v861_v4 = vpop.f32.mrf.mxu1  ;;  %v1017_v5 = vpop.f32.mrf.mxu0 }
 0x227   : > { %v1018_v6 = vadd.f32 %v3854_v1, %v1017_v5  ;;  %v862_v47 = vadd.f32 %v3851_v40, %v861_v4 }
 0x228   : > { %v4251_v7 = vpop.f32.mrf.mxu1  ;;  %v4275_v8 = vpop.f32.mrf.mxu0 }
 0x229   : > { %v1293_v12 = vpack.c.bf16 %v1018_v6, %v1018_v6  ;;  %v1286_v55 = vmul.f32 0.35355338, %v862_v47 }
 0x22a   : > { %v864_v13 = vpop.f32.mrf.mxu1  ;;  %v1020_v14 = vpop.f32.mrf.mxu0 }
 0x22b   : > { %v1396_v15 = vsel %vm1299_vm2, %v1293_v12, 0  ;;  %4320 = vmatmul.mubr.msk.bf16.vlgmr.msra.gmra.mxu0 %vm1299_vm2, %v1287_v10  ;;  %v1290_v59 = vpack.c.bf16 %v1286_v55, %v1286_v55 }
 0x22c   : > { %v4252_v16 = vpop.f32.mrf.mxu1  ;;  %v4276_v17 = vpop.f32.mrf.mxu0  ;;  %4330 = vmatpush3.bf16.xpose.msra.mxu0 %v1396_v15  ;;  %4331 = vmatprep.mubr.msk.bf16.mxu0 %vm4807_vm1, %v4806_v9 }
 0x22d   : > { %4341 = vmatprep.subr.bf16.mxu0 %v4806_v9 }
 0x22e   : > { %v965_v22 = vpop.f32.mrf.mxu1  ;;  %v1121_v23 = vpop.f32.mrf.mxu0 }
 0x22f   : > { %v966_v24 = vadd.f32 %v3853_v18, %v965_v22  ;;  %v1122_v25 = vadd.f32 %v3856_v19, %v1121_v23 }
 0x230   : > { %v4267_v26 = vpop.f32.mrf.mxu1  ;;  %v4291_v27 = vpop.f32.mrf.mxu0 }
 0x231   : > { %v1292_v30 = vpack.c.bf16 %v966_v24, %v966_v24  ;;  %v1295_v31 = vpack.c.bf16 %v1122_v25, %v1122_v25 }
 0x232   : > { %v968_v32 = vpop.f32.mrf.mxu1  ;;  %v1124_v33 = vpop.f32.mrf.mxu0 }
 0x233   : > { %v1350_v34 = vsel %vm1299_vm2, %v1292_v30, 0  ;;  %v1537_v35 = vsel %vm1535_vm3, %v1295_v31, 0  ;;  %4332 = vmatmul.mubr.msk.bf16.vlgmr.msra.gmra.mxu0 %vm1299_vm2, %v1289_v28 }
 0x234   : > { %v4268_v36 = vpop.f32.mrf.mxu1  ;;  %v4292_v37 = vpop.f32.mrf.mxu0  ;;  %4324 = vmatpush3.bf16.xpose.msra.mxu1 %v1350_v34  ;;  %4342 = vmatpush3.bf16.msra.mxu0 %v1537_v35 }
 0x235   : > { %4335 = vmatprep.subr.bf16.mxu1 %v4806_v9  ;;  %4343 = vmatprep.mubr.msk.bf16.mxu0 %vm4807_vm1, %v4806_v9 }
 0x236   : > { %v1069_v41 = vpop.f32.mrf.mxu1  ;;  %v5146_v42 = vpop.f32.mrf.mxu0  ;;  %4353 = vmatprep.subr.bf16.mxu0 %v4806_v9 }
 0x237   : > { %v1070_v43 = vadd.f32 %v3855_v38, %v1069_v41 }
 0x238   : > { %v4283_v44 = vpop.f32.mrf.mxu1  ;;  %v4307_v45 = vpop.f32.mrf.mxu0 }
 0x239   : > { %v1294_v48 = vpack.c.bf16 %v1070_v43, %v1070_v43 }
 0x23a   : > { %v1072_v49 = vpop.f32.mrf.mxu1  ;;  %v1228_v50 = vpop.f32.mrf.mxu0 }
 0x23b   : > { %v1442_v51 = vsel %vm1299_vm2, %v1294_v48, 0  ;;  %4326 = vmatmul.mubr.msk.bf16.vlgmr.msra.gmra.mxu1 %vm1299_vm2, %v1288_v46  ;;  %v3858_v48 = vld [vmem:[%s5675_s4 + $0xa] ss:$0 sm:$0xff] }
 0x23c   : > { %v4284_v52 = vpop.f32.mrf.mxu1  ;;  %v4308_v53 = vpop.f32.mrf.mxu0  ;;  %4336 = vmatpush3.bf16.xpose.msra.mxu1 %v1442_v51  ;;  %4337 = vmatprep.mubr.msk.bf16.mxu1 %vm4807_vm1, %v4806_v9  ;;  %v1226_v50 = vadd.f32 %v3858_v48, %v5146_v42  ;;  %v3859_v42 = vld [vmem:[%s5675_s4 + $0xb] ss:$0 sm:$0xff] }
 0x23d   : > { %4347 = vmatprep.subr.bf16.mxu1 %v4806_v9 }
 0x23e   : > { %v1173_v56 = vpop.f32.mrf.mxu1  ;;  %v1297_v52 = vpack.c.bf16 %v1226_v50, %v1226_v50 }
 0x23f   : > { %v1174_v57 = vadd.f32 %v3857_v54, %v1173_v56 }
 0x240   : > { %v4299_v58 = vpop.f32.mrf.mxu1  ;;  %v1629_v56 = vsel %vm1535_vm3, %v1297_v52, 0  ;;  %v3908_v52 = vld [vmem:[%s5652_s6] ss:$0 sm:$0xff] }
 0x241   : > { %v1296_v60 = vpack.c.bf16 %v1174_v57, %v1174_v57 }
 0x242   : > { %v1176_v61 = vpop.f32.mrf.mxu1 }
 0x243   : > { %v1583_v62 = vsel %vm1535_vm3, %v1296_v60, 0  ;;  %4338 = vmatmul.mubr.msk.bf16.vlgmr.msra.gmra.mxu1 %vm1299_vm2, %v1290_v59 }
 0x244   : > { %v4300_v63 = vpop.f32.mrf.mxu1  ;;  %4348 = vmatpush3.bf16.msra.mxu1 %v1583_v62  ;;  %4349 = vmatprep.mubr.msk.bf16.mxu1 %vm4807_vm1, %v4806_v9 }
 0x245   : > { %4359 = vmatprep.subr.bf16.mxu1 %v4806_v9 }
 0x246   : > { %v5162_v1 = vpop.f32.mrf.mxu1 }
 0x247   : > { %v1278_v61 = vadd.f32 %v3859_v42, %v5162_v1 }
 0x248   : > { %v4315_v2 = vpop.f32.mrf.mxu1 }
 0x249   : > { %v1298_v63 = vpack.c.bf16 %v1278_v61, %v1278_v61 }
 0x24a   : > { %v1280_v3 = vpop.f32.mrf.mxu1 }
 0x24c   : > { %v4316_v4 = vpop.f32.mrf.mxu1 }
 0x24d   : > { %v1675_v4 = vsel %vm1535_vm3, %v1298_v63, 0 }
 0x2eb   : > { %v1340_v5 = vpop.f32.mrf.mxu0 }
 0x2ec   : > { %v1484_v6 = vsel %vm1299_vm2, %v1340_v5, -inf }
 0x2ed   : > { %1485 = vmax.xlane.f32.xlu1 %v1484_v6  ;;  %v4321_v7 = vpop.f32.mrf.mxu0 }
 0x2ee   : > { %v1721_v7 = vld [vmem:[%s5676_s5] sm:$0xf] }
 0x2ef   : > { %v1343_v8 = vpop.f32.mrf.mxu0 }
 0x2f0   : > { %v1729_v8 = vsel %vm1535_vm3, %v1721_v7, 0 }
 0x2f1   : > { %v4322_v10 = vpop.f32.mrf.mxu0 }
 0x2f2   : > { %v1722_v10 = vld [vmem:[%s5676_s5 + $0x4] sm:$0xf] }
 0x2f3   : > { %v1432_v11 = vpop.f32.mrf.mxu0 }
 0x2f4   : > { %v1490_v12 = vsel %vm1299_vm2, %v1432_v11, -inf }
 0x2f5   : > { %1491 = vmax.xlane.f32.xlu0 %v1490_v12  ;;  %v4333_v13 = vpop.f32.mrf.mxu0  ;;  %v1723_v12 = vld [vmem:[%s5676_s5 + $0x8] sm:$0xf] }
 0x2f7   : > { %v1435_v14 = vpop.f32.mrf.mxu0 }
 0x2f9   : > { %v4334_v15 = vpop.f32.mrf.mxu0 }
 0x2fa   : > { %v1821_v15 = vsel %vm1535_vm3, %v1723_v12, 0 }
 0x2fb   : > { %v1386_v16 = vpop.f32.mrf.mxu1 }
 0x2fc   : > { %v1487_v17 = vsel %vm1299_vm2, %v1386_v16, -inf }
 0x2fd   : > { %1488 = vmax.xlane.f32.xlu1 %v1487_v17  ;;  %v4327_v18 = vpop.f32.mrf.mxu1 }
 0x2ff   : > { %v1389_v19 = vpop.f32.mrf.mxu1 }
 0x301   : > { %v4328_v20 = vpop.f32.mrf.mxu1 }
 0x303   : > { %v1478_v21 = vpop.f32.mrf.mxu1 }
 0x304   : > { %v1493_v22 = vsel %vm1299_vm2, %v1478_v21, -inf }
 0x305   : > { %1494 = vmax.xlane.f32.xlu1 %v1493_v22  ;;  %v4339_v23 = vpop.f32.mrf.mxu1 }
 0x307   : > { %v1481_v24 = vpop.f32.mrf.mxu1 }
 0x308   : > { %v1724_v24 = vld [vmem:[%s5676_s5 + $0xc] sm:$0xf] }
 0x309   : > { %v4340_v25 = vpop.f32.mrf.mxu1 }
 0x376   : > { %v1486_v26 = vpop.xlane.xlu1 %1485 }
 0x377   : > { %v1496_v27 = vsub.f32 %v1340_v5, %v1486_v26 }
 0x379   : > { %v1500_v28 = vmul.f32 1.442695, %v1496_v27  ;;  %v1867_v27 = vsel %vm1535_vm3, %v1724_v24, 0 }
 0x37b   : > { %4700 = vpow2.f32 %v1500_v28 }
 0x37e   : > { %v1492_v29 = vpop.xlane.xlu0 %1491 }
 0x37f   : > { %v1498_v30 = vsub.f32 %v1432_v11, %v1492_v29  ;;  %v1775_v11 = vsel %vm1535_vm3, %v1722_v10, 0 }
 0x381   : > { %v1504_v31 = vmul.f32 1.442695, %v1498_v30 }
 0x383   : > { %4702 = vpow2.f32 %v1504_v31 }
 0x386   : > { %v1489_v32 = vpop.xlane.xlu1 %1488 }
 0x387   : > { %v1497_v33 = vsub.f32 %v1386_v16, %v1489_v32 }
 0x388   : > { %v4701_v34 = vpop.eup %4700 }
 0x389   : > { %v1502_v35 = vmul.f32 1.442695, %v1497_v33  ;;  %v1508_v36 = vsel %vm1299_vm2, %v4701_v34, 0.0 }
 0x38a   : > { %1509 = vadd.xlane.f32.xlu0 %v1508_v36 }
 0x38b   : > { %4704 = vpow2.f32 %v1502_v35 }
 0x38e   : > { %v1495_v37 = vpop.xlane.xlu1 %1494 }
 0x38f   : > { %v1499_v38 = vsub.f32 %v1478_v21, %v1495_v37 }
 0x390   : > { %v4703_v39 = vpop.eup %4702 }
 0x391   : > { %v1506_v40 = vmul.f32 1.442695, %v1499_v38  ;;  %v1514_v41 = vsel %vm1299_vm2, %v4703_v39, 0.0 }
 0x392   : > { %1515 = vadd.xlane.f32.xlu0 %v1514_v41 }
 0x393   : > { %4706 = vpow2.f32 %v1506_v40 }
 0x398   : > { %v4705_v43 = vpop.eup %4704 }
 0x399   : > { %v1511_v44 = vsel %vm1299_vm2, %v4705_v43, 0.0 }
 0x39a   : > { %1512 = vadd.xlane.f32.xlu1 %v1511_v44 }
 0x3a0   : > { %v4707_v45 = vpop.eup %4706 }
 0x3a1   : > { %v1517_v46 = vsel %vm1299_vm2, %v4707_v45, 0.0 }
 0x3a2   : > { %1518 = vadd.xlane.f32.xlu1 %v1517_v46 }
 0x413   : > { %v1510_v47 = vpop.xlane.xlu0 %1509 }
 0x414   : > { %4708 = vrcp.f32 %v1510_v47 }
 0x41b   : > { %v1516_v49 = vpop.xlane.xlu0 %1515 }
 0x41c   : > { %4710 = vrcp.f32 %v1516_v49 }
 0x421   : > { %v4709_v51 = vpop.eup %4708 }
 0x422   : > { %v1524_v53 = vmul.f32 %v4709_v51, %v4701_v34 }
 0x423   : > { %v1513_v54 = vpop.xlane.xlu1 %1512 }
 0x424   : > { %4712 = vrcp.f32 %v1513_v54  ;;  %v1528_v55 = vpack.c.bf16 %v1524_v53, %v1524_v53 }
 0x426   : > { %4344 = vmatmul.mubr.msk.bf16.vlgmr.msra.gmra.mxu0 %vm1299_vm2, %v1528_v55 }
 0x427   : > { %4354 = vmatpush3.bf16.msra.mxu0 %v1629_v56  ;;  %4355 = vmatprep.mubr.msk.bf16.mxu0 %vm4807_vm1, %v4806_v9 }
 0x428   : > { %4365 = vmatprep.subr.bf16.mxu0 %v4806_v9 }
 0x429   : > { %v4711_v57 = vpop.eup %4710 }
 0x42a   : > { %v1526_v58 = vmul.f32 %v4711_v57, %v4703_v39 }
 0x42b   : > { %v1519_v59 = vpop.xlane.xlu1 %1518 }
 0x42c   : > { %4714 = vrcp.f32 %v1519_v59  ;;  %v1530_v60 = vpack.c.bf16 %v1526_v58, %v1526_v58 }
 0x42e   : > { %4356 = vmatmul.mubr.msk.bf16.vlgmr.msra.gmra.mxu0 %vm1299_vm2, %v1530_v60 }
 0x42f   : > { %4367 = vmatprep.mubr.msk.bf16.mxu0 %vm4807_vm1, %v4806_v9  ;;  %4366 = vmatpush3.bf16.msra.mxu0 %v1729_v8  ;;  %v3910_v8 = vld [vmem:[%s5654_s8] ss:$0 sm:$0xff] }
 0x430   : > { %4377 = vmatprep.subr.bf16.mxu0 %v4806_v9 }
 0x431   : > { %v4713_v62 = vpop.eup %4712 }
 0x432   : > { %v1525_v2 = vmul.f32 %v4713_v62, %v4705_v43 }
 0x434   : > { %v1529_v3 = vpack.c.bf16 %v1525_v2, %v1525_v2  ;;  %v4662_v2 = vld [vmem:[%s5655_s9 + $0x8] sm:$0xff]  }
 0x436   : > { %4350 = vmatmul.mubr.msk.bf16.vlgmr.msra.gmra.mxu1 %vm1299_vm2, %v1529_v3 }
 0x437   : > { %4360 = vmatpush3.bf16.msra.mxu1 %v1675_v4  ;;  %4361 = vmatprep.mubr.msk.bf16.mxu1 %vm4807_vm1, %v4806_v9 }
 0x438   : > { %4371 = vmatprep.subr.bf16.mxu1 %v4806_v9 }
 0x439   : > { %v4715_v1 = vpop.eup %4714 }
 0x43a   : > { %v1527_v5 = vmul.f32 %v4715_v1, %v4707_v45 }
 0x43c   : > { %v1531_v6 = vpack.c.bf16 %v1527_v5, %v1527_v5 }
 0x43e   : > { %4362 = vmatmul.mubr.msk.bf16.vlgmr.msra.gmra.mxu1 %vm1299_vm2, %v1531_v6  ;;  %v3909_v6 = vld [vmem:[%s5653_s7] ss:$0 sm:$0xff] }
 0x43f   : > { %4373 = vmatprep.mubr.msk.bf16.mxu1 %vm4807_vm1, %v4806_v9  ;;  %4372 = vmatpush3.bf16.msra.mxu1 %v1775_v11 }
 0x440   : > { %4383 = vmatprep.subr.bf16.mxu1 %v4806_v9 }
 0x4e6   : > { %v1573_v13 = vpop.f32.mrf.mxu0 }
 0x4e7   : > { %v1717_v14 = vpack.c.bf16 %v1573_v13, %v1573_v13  ;;  %v4664_v13 = vld [vmem:[%s5657_s11 + $0x18] sm:$0xff]  }
 0x4e8   : > { %v4345_v16 = vpop.f32.mrf.mxu0 }
 0x4e9   : > { %4368 = vmatmul.mubr.msk.bf16.vlgmr.msra.gmra.mxu0 %vm1299_vm2, %v1717_v14  ;;  %v4665_v14 = vld [vmem:[%s5657_s11 + $0x10] sm:$0xff]   ;;  %v4667_v16 = vld [vmem:[%s5657_s11] sm:$0xff]  }
 0x4ea   : > { %v1576_v17 = vpop.f32.mrf.mxu0  ;;  %4378 = vmatpush3.bf16.msra.mxu0 %v1821_v15  ;;  %4379 = vmatprep.mubr.msk.bf16.mxu0 %vm4807_vm1, %v4806_v9  ;;  %v4666_v15 = vld [vmem:[%s5657_s11 + $0x8] sm:$0xff]  }
 0x4eb   : > { %4389 = vmatprep.subr.bf16.mxu0 %v4806_v9  ;;  %v3911_v17 = vld [vmem:[%s5656_s10] ss:$0 sm:$0xff] }
 0x4ec   : > { %v4346_v18 = vpop.f32.mrf.mxu0 }
 0x4ee   : > { %v1665_v19 = vpop.f32.mrf.mxu0 }
 0x4ef   : > { %v1719_v20 = vpack.c.bf16 %v1665_v19, %v1665_v19 }
 0x4f0   : > { %v4357_v21 = vpop.f32.mrf.mxu0 }
 0x4f1   : > { %4380 = vmatmul.mubr.msk.bf16.vlgmr.msra.gmra.mxu0 %vm1299_vm2, %v1719_v20 }
 0x4f2   : > { %v1668_v22 = vpop.f32.mrf.mxu0  ;;  %4393 = vmatprep.mubr.msk.bf16.mxu0 %vm4807_vm1, %v4806_v9  ;;  %4390 = vmatpush3.bf16.msra.mxu0 %v4662_v2  ;;  %v4676_v2 = vld [vmem:[%s5672_s3 + $0xf8] sm:$0xff]  }
 0x4f3   : > { %4391 = vmatprep.subr.bf16.mxu0 %v4806_v9 }
 0x4f4   : > { %v4358_v23 = vpop.f32.mrf.mxu0 }
 0x4f6   : > { %v1619_v25 = vpop.f32.mrf.mxu1 }
 0x4f7   : > { %v1718_v26 = vpack.c.bf16 %v1619_v25, %v1619_v25 }
 0x4f8   : > { %v4351_v28 = vpop.f32.mrf.mxu1 }
 0x4f9   : > { %4374 = vmatmul.mubr.msk.bf16.vlgmr.msra.gmra.mxu1 %vm1299_vm2, %v1718_v26 }
 0x4fa   : > { %v1622_v29 = vpop.f32.mrf.mxu1  ;;  %4384 = vmatpush3.bf16.msra.mxu1 %v1867_v27  ;;  %4385 = vmatprep.mubr.msk.bf16.mxu1 %vm4807_vm1, %v4806_v9 }
 0x4fb   : > { %4397 = vmatprep.subr.bf16.mxu1 %v4806_v9 }
 0x4fc   : > { %v4352_v30 = vpop.f32.mrf.mxu1 }
 0x4fe   : > { %v1711_v31 = vpop.f32.mrf.mxu1 }
 0x4ff   : > { %v1720_v32 = vpack.c.bf16 %v1711_v31, %v1711_v31 }
 0x500   : > { %v4363_v33 = vpop.f32.mrf.mxu1 }
 0x501   : > { %4386 = vmatmul.mubr.msk.bf16.vlgmr.msra.gmra.mxu1 %vm1299_vm2, %v1720_v32  ;;  %v3915_v33 = vld [vmem:[%s5658_s12] ss:$0 sm:$0xff] }
 0x502   : > { %v1714_v34 = vpop.f32.mrf.mxu1  ;;  %4405 = vmatprep.mubr.msk.bf16.mxu1 %vm4807_vm1, %v4806_v9  ;;  %4398 = vmatpush3.bf16.msra.mxu1 %v4664_v13  ;;  %v4688_v13 = vld [vmem:[%s5672_s3 + $0x158] sm:$0xff]  }
 0x503   : > { %4399 = vmatprep.subr.bf16.mxu1 %v4806_v9 }
 0x504   : > { %v4364_v35 = vpop.f32.mrf.mxu1 }
 0x506   : > { %4400 = vmatpush3.bf16.msra.mxu1 %v4665_v14  ;;  %v4689_v14 = vld [vmem:[%s5672_s3 + $0x150] sm:$0xff]  }
 0x507   : > { %4401 = vmatprep.subr.bf16.mxu1 %v4806_v9 }
 0x50a   : > { %4402 = vmatpush3.bf16.msra.mxu1 %v4666_v15  ;;  %v4690_v15 = vld [vmem:[%s5672_s3 + $0x178] sm:$0xff]  }
 0x50b   : > { %4403 = vmatprep.subr.bf16.mxu1 %v4806_v9 }
 0x50e   : > { %4404 = vmatpush3.bf16.msra.mxu1 %v4667_v16  ;;  %v4691_v16 = vld [vmem:[%s5672_s3 + $0x170] sm:$0xff]  }
 0x50f   : > { %4425 = vmatprep.subr.bf16.mxu1 %v4806_v9 }
 0x5a9   : > { %v1765_v36 = vpop.f32.mrf.mxu0 }
 0x5ab   : > { %v4369_v37 = vpop.f32.mrf.mxu0 }
 0x5ad   : > { %v1768_v38 = vpop.f32.mrf.mxu0 }
 0x5af   : > { %v4370_v39 = vpop.f32.mrf.mxu0 }
 0x5b1   : > { %v1857_v40 = vpop.f32.mrf.mxu0 }
 0x5b3   : > { %v4381_v41 = vpop.f32.mrf.mxu0 }
 0x5b5   : > { %v1860_v43 = vpop.f32.mrf.mxu0 }
 0x5b7   : > { %v4382_v44 = vpop.f32.mrf.mxu0 }
 0x5b9   : > { %v1811_v45 = vpop.f32.mrf.mxu1 }
 0x5ba   : > { %v1909_v47 = vadd.f32 %v1811_v45, %v1765_v36 }
 0x5bb   : > { %v4375_v46 = vpop.f32.mrf.mxu1 }
 0x5bc   : > { %v1910_v50 = vadd.f32 %v1909_v47, %v1857_v40  ;;  %v4668_v47 = vld [vmem:[%s5672_s3 + $0xc8] sm:$0xff]  }
 0x5bd   : > { %v1814_v48 = vpop.f32.mrf.mxu1 }
 0x5be   : > { %v4669_v48 = vld [vmem:[%s5672_s3 + $0xe8] sm:$0xff]  }
 0x5bf   : > { %v4376_v49 = vpop.f32.mrf.mxu1 }
 0x5c0   : > { %v4670_v49 = vld [vmem:[%s5672_s3 + $0xc0] sm:$0xff]  }
 0x5c1   : > { %v1903_v51 = vpop.f32.mrf.mxu1 }
 0x5c2   : > { %v1911_v53 = vadd.f32 %v1910_v50, %v1903_v51  ;;  %v4671_v50 = vld [vmem:[%s5672_s3 + $0xe0] sm:$0xff]  }
 0x5c3   : > { %v4387_v54 = vpop.f32.mrf.mxu1 }
 0x5c4   : > { %v1919_v55 = vadd.f32 %v3908_v52, %v1911_v53 }
 0x5c5   : > { %v1906_v56 = vpop.f32.mrf.mxu1 }
 0x5c6   : > { %v5232_v57 = vadd.f32 %v1919_v55, %v4942_v0  ;;  %v4663_v0 = vld [vmem:[%s5655_s9] sm:$0xff]  }
 0x5c7   : > { %v4388_v58 = vpop.f32.mrf.mxu1  ;;  %4392 = vmatpush3.bf16.msra.mxu0 %v4663_v0  ;;  %v3923_v55 = vld [vmem:[%s5673_s1 + $0x1] ss:$0 sm:$0xff]  ;;  %v4677_v0 = vld [vmem:[%s5672_s3 + $0x128] sm:$0xff]   ;;  %s3781_s1 = sshll.u32 %s485_s25, 4  ;;  %s3782_s1 = int_to_ptr.vmem [resolvable:$true] %s3781_s1 }
 0x5c8   : > { %v1923_v42 = vsel %vm494_vm0, %v5232_v57, 0.0  ;;  %4409 = vmatprep.subr.bf16.mxu0 %v4806_v9  ;;  %s4744_s26 = scalar_lea.vmem %s3782_s1, 128  ;;  %p4751_p0 = scmp.lt.s32.totalorder %s3782_s1, %s4749_s17 }
 0x5c9   : > { %1924 = vadd.xlane.f32.xlu0 %v1923_v42  ;;  %p4745_p11 = scmp.ne.s32.totalorder %s3782_s1, %s4744_s26  ;;  %p4752_p1 = scmp.lt.s32.totalorder %s4750_s22, %s4744_s26 }
 0x5cb   : > { %p4746_p12 = pnand %p4745_p11, %p4927_p5  ;;  %p4753_p2 = por %p4752_p1, %p4751_p0 }
 0x5cd   : > { %p4747_p13 = pneg %p4746_p12 }
 0x5cf   : > { %p4754_p3 = pnand %p4753_p2, %p4747_p13 }
 0x652   : > { %v1925_v59 = vpop.xlane.xlu0 %1924 }
 0x653   : > { %v1926_v60 = vmul.f32 0.03125, %v1925_v59  ;;  %v4672_v59 = vld [vmem:[%s5672_s3 + $0xd8] sm:$0xff]  }
 0x655   : > { %v1927_v61 = vsub.f32 %v5232_v57, %v1926_v60  ;;  %v4673_v60 = vld [vmem:[%s5672_s3 + $0x108] sm:$0xff]  }
 0x657   : > { %v1928_v62 = vmul.f32 %v1927_v61, %v1927_v61 }
 0x659   : > { %v1929_v63 = vsel %vm494_vm0, %v1928_v62, 0.0  ;;  %v4674_v62 = vld [vmem:[%s5672_s3 + $0xd0] sm:$0xff]  }
 0x65a   : > { %1930 = vadd.xlane.f32.xlu1 %v1929_v63  ;;  %v4675_v63 = vld [vmem:[%s5672_s3 + $0x100] sm:$0xff]  }
 0x6e3   : > { %v1931_v3 = vpop.xlane.xlu1 %1930 }
 0x6e4   : > { %v1932_v4 = vmul.f32 0.03125, %v1931_v3  ;;  %v4678_v3 = vld [vmem:[%s5672_s3 + $0xf0] sm:$0xff]  }
 0x6e6   : > { %v1933_v1 = vadd.f32 1e-06, %v1932_v4  ;;  %v4679_v4 = vld [vmem:[%s5672_s3 + $0x120] sm:$0xff]  }
 0x6e8   : > { %4716 = vrsqrt.f32 %v1933_v1  ;;  %v4680_v1 = vld [vmem:[%s5672_s3 + $0x118] sm:$0xff]  }
 0x6f5   : > { %v4717_v5 = vpop.eup %4716 }
 0x6f6   : > { %v1935_v7 = vmul.f32 %v4717_v5, %v1927_v61  ;;  %v4681_v5 = vld [vmem:[%s5672_s3 + $0x148] sm:$0xff]  }
 0x6f8   : > { %v1942_v10 = vmul.f32 %v3909_v6, %v1935_v7  ;;  %v4682_v6 = vld [vmem:[%s5672_s3 + $0x110] sm:$0xff]   ;;  %v4683_v7 = vld [vmem:[%s5672_s3 + $0x140] sm:$0xff]  }
 0x6fa   : > { %v1949_v11 = vadd.f32 %v3910_v8, %v1942_v10  ;;  %v4684_v8 = vld [vmem:[%s5672_s3 + $0x138] sm:$0xff]   ;;  %v4685_v10 = vld [vmem:[%s5672_s3 + $0x168] sm:$0xff]  }
 0x6fc   : > { %v1950_v12 = vpack.c.bf16 %v1949_v11, %v1949_v11  ;;  %v4686_v11 = vld [vmem:[%s5672_s3 + $0x130] sm:$0xff]  }
 0x6fe   : > { %4394 = vmatmul.mubr.msk.bf16.vlgmr.msra.gmra.mxu0 %vm494_vm0, %v1950_v12  ;;  %v4687_v12 = vld [vmem:[%s5672_s3 + $0x160] sm:$0xff]  }
 0x6ff   : > { %4413 = vmatprep.mubr.msk.bf16.mxu0 %vm4807_vm1, %v4806_v9  ;;  %4410 = vmatpush3.bf16.msra.mxu0 %v4668_v47 }
 0x700   : > { %4411 = vmatprep.subr.bf16.mxu0 %v4806_v9 }
 0x703   : > { %4412 = vmatpush3.bf16.msra.mxu0 %v4670_v49 }
 0x704   : > { %4417 = vmatprep.subr.bf16.mxu0 %v4806_v9 }
 0x7be   : > { %v2011_v18 = vpop.f32.mrf.mxu0 }
 0x7bf   : > { %v2012_v19 = vadd.f32 %v3911_v17, %v2011_v18 }
 0x7c0   : > { %v4395_v20 = vpop.f32.mrf.mxu0 }
 0x7c1   : > { %v2018_v21 = vmul.f32 0.044715, %v2012_v19  ;;  %v2017_v29 = vmul.f32 0.5, %v2012_v19 }
 0x7c2   : > { %v2014_v22 = vpop.f32.mrf.mxu0 }
 0x7c3   : > { %v2019_v23 = vmul.f32 %v2018_v21, %v2012_v19 }
 0x7c4   : > { %v4396_v24 = vpop.f32.mrf.mxu0 }
 0x7c5   : > { %v2020_v25 = vmul.f32 %v2019_v23, %v2012_v19 }
 0x7c7   : > { %v2021_v26 = vadd.f32 %v2020_v25, %v2012_v19  ;;  %v3989_v25 = vld [vmem:[%s5675_s4 + $0x10] ss:$0 sm:$0xff] }
 0x7c9   : > { %v2022_v27 = vmul.f32 0.7978846, %v2021_v26  ;;  %v3985_v26 = vld [vmem:[%s5675_s4 + $0xc] ss:$0 sm:$0xff] }
 0x7cb   : > { %4718 = vtanh.f32 %v2022_v27 }
 0x7d8   : > { %v4719_v28 = vpop.eup %4718 }
 0x7d9   : > { %v2024_v30 = vadd.f32 1.0, %v4719_v28 }
 0x7db   : > { %v2025_v31 = vmul.f32 %v2024_v30, %v2017_v29 }
 0x7dd   : > { %v2026_v32 = vpack.c.bf16 %v2025_v31, %v2025_v31 }
 0x7df   : > { %4406 = vmatmul.mubr.msk.bf16.vlgmr.msra.gmra.mxu1 %vm2066_vm4, %v2026_v32 }
 0x7e0   : > { %4429 = vmatprep.mubr.msk.bf16.mxu1 %vm4807_vm1, %v4806_v9  ;;  %4426 = vmatpush3.bf16.msra.mxu1 %v4669_v48 }
 0x7e1   : > { %4427 = vmatprep.subr.bf16.mxu1 %v4806_v9 }
 0x7e4   : > { %4428 = vmatpush3.bf16.msra.mxu1 %v4671_v50 }
 0x7e5   : > { %4441 = vmatprep.subr.bf16.mxu1 %v4806_v9 }
 0x89f   : > { %v2104_v34 = vpop.f32.mrf.mxu1 }
 0x8a0   : > { %v2105_v35 = vadd.f32 %v3915_v33, %v2104_v34 }
 0x8a1   : > { %v4407_v36 = vpop.f32.mrf.mxu1 }
 0x8a2   : > { %v5281_v37 = vadd.f32 %v2105_v35, %v5232_v57  ;;  %v3924_v57 = vld [vmem:[%s5674_s2 + $0x1] ss:$0 sm:$0xff] }
 0x8a3   : > { %v2107_v38 = vpop.f32.mrf.mxu1 }
 0x8a4   : > { %v2115_v39 = vsel %vm494_vm0, %v5281_v37, 0.0 }
 0x8a5   : > { %2116 = vadd.xlane.f32.xlu0 %v2115_v39  ;;  %v4408_v40 = vpop.f32.mrf.mxu1 }
 0x8a6   : > { %v3991_v40 = vld [vmem:[%s5675_s4 + $0x12] ss:$0 sm:$0xff] }
 0x92e   : > { %v2117_v41 = vpop.xlane.xlu0 %2116 }
 0x92f   : > { %v2118_v43 = vmul.f32 0.03125, %v2117_v41 }
 0x931   : > { %v2119_v44 = vsub.f32 %v5281_v37, %v2118_v43  ;;  %v3987_v43 = vld [vmem:[%s5675_s4 + $0xe] ss:$0 sm:$0xff] }
 0x933   : > { %v2120_v45 = vmul.f32 %v2119_v44, %v2119_v44 }
 0x935   : > { %v2121_v46 = vsel %vm494_vm0, %v2120_v45, 0.0 }
 0x936   : > { %2122 = vadd.xlane.f32.xlu1 %v2121_v46 }
 0x9bf   : > { %v2123_v51 = vpop.xlane.xlu1 %2122 }
 0x9c0   : > { %v2124_v52 = vmul.f32 0.03125, %v2123_v51 }
 0x9c2   : > { %v2125_v53 = vadd.f32 1e-06, %v2124_v52 }
 0x9c4   : > { %4720 = vrsqrt.f32 %v2125_v53 }
 0x9d1   : > { %v4721_v54 = vpop.eup %4720 }
 0x9d2   : > { %v2127_v56 = vmul.f32 %v4721_v54, %v2119_v44 }
 0x9d4   : > { %v2134_v58 = vmul.f32 %v3923_v55, %v2127_v56 }
 0x9d6   : > { %v2141_v42 = vadd.f32 %v3924_v57, %v2134_v58  ;;  %v3990_v57 = vld [vmem:[%s5675_s4 + $0x11] ss:$0 sm:$0xff]  ;;  %v3993_v58 = vld [vmem:[%s5675_s4 + $0x14] ss:$0 sm:$0xff] }
 0x9d8   : > { %v5315_v61 = vpack.c.bf16 %v2141_v42, %v2141_v42 }
 0x9da   : > { %4414 = vmatmul.mubr.msk.bf16.vlgmr.msra.gmra.mxu0 %vm494_vm0, %v5315_v61  ;;  %4430 = vmatmul.mubr.msk.bf16.vlgmr.msra.gmra.mxu1 %vm494_vm0, %v5315_v61 }
 0x9db   : > { %4418 = vmatpush3.bf16.msra.mxu0 %v4672_v59  ;;  %4442 = vmatpush3.bf16.msra.mxu1 %v4673_v60  ;;  %v3986_v59 = vld [vmem:[%s5675_s4 + $0xd] ss:$0 sm:$0xff] }
 0x9dc   : > { %4419 = vmatprep.subr.bf16.mxu0 %v4806_v9  ;;  %4443 = vmatprep.subr.bf16.mxu1 %v4806_v9 }
 0x9dd   : > { %4421 = vmatprep.mubr.msk.bf16.mxu0 %vm4807_vm1, %v4806_v9  ;;  %4445 = vmatprep.mubr.msk.bf16.mxu1 %vm4807_vm1, %v4806_v9 }
 0x9df   : > { %4420 = vmatpush3.bf16.msra.mxu0 %v4674_v62  ;;  %4444 = vmatpush3.bf16.msra.mxu1 %v4675_v63 }
 0x9e0   : > { %4433 = vmatprep.subr.bf16.mxu0 %v4806_v9  ;;  %4457 = vmatprep.subr.bf16.mxu1 %v4806_v9 }
 0x9e2   : > { %4422 = vmatmul.mubr.msk.bf16.vlgmr.msra.gmra.mxu0 %vm494_vm0, %v5315_v61  ;;  %4446 = vmatmul.mubr.msk.bf16.vlgmr.msra.gmra.mxu1 %vm494_vm0, %v5315_v61 }
 0x9e3   : > { %4434 = vmatpush3.bf16.msra.mxu0 %v4676_v2  ;;  %4458 = vmatpush3.bf16.msra.mxu1 %v4677_v0 }
 0x9e4   : > { %4435 = vmatprep.subr.bf16.mxu0 %v4806_v9  ;;  %4459 = vmatprep.subr.bf16.mxu1 %v4806_v9 }
 0x9e5   : > { %4437 = vmatprep.mubr.msk.bf16.mxu0 %vm4807_vm1, %v4806_v9  ;;  %4461 = vmatprep.mubr.msk.bf16.mxu1 %vm4807_vm1, %v4806_v9 }
 0x9e7   : > { %4436 = vmatpush3.bf16.msra.mxu0 %v4678_v3  ;;  %4460 = vmatpush3.bf16.msra.mxu1 %v4679_v4 }
 0x9e8   : > { %4449 = vmatprep.subr.bf16.mxu0 %v4806_v9  ;;  %4473 = vmatprep.subr.bf16.mxu1 %v4806_v9 }
 0x9ea   : > { %4438 = vmatmul.mubr.msk.bf16.vlgmr.msra.gmra.mxu0 %vm494_vm0, %v5315_v61  ;;  %4462 = vmatmul.mubr.msk.bf16.vlgmr.msra.gmra.mxu1 %vm494_vm0, %v5315_v61 }
 0x9eb   : > { %4450 = vmatpush3.bf16.msra.mxu0 %v4680_v1  ;;  %4474 = vmatpush3.bf16.msra.mxu1 %v4681_v5 }
 0x9ec   : > { %4451 = vmatprep.subr.bf16.mxu0 %v4806_v9  ;;  %4475 = vmatprep.subr.bf16.mxu1 %v4806_v9 }
 0x9ed   : > { %4453 = vmatprep.mubr.msk.bf16.mxu0 %vm4807_vm1, %v4806_v9  ;;  %4477 = vmatprep.mubr.msk.bf16.mxu1 %vm4807_vm1, %v4806_v9 }
 0x9ef   : > { %4452 = vmatpush3.bf16.msra.mxu0 %v4682_v6  ;;  %4476 = vmatpush3.bf16.msra.mxu1 %v4683_v7 }
 0x9f0   : > { %4465 = vmatprep.subr.bf16.mxu0 %v4806_v9  ;;  %4489 = vmatprep.subr.bf16.mxu1 %v4806_v9 }
 0x9f2   : > { %4454 = vmatmul.mubr.msk.bf16.vlgmr.msra.gmra.mxu0 %vm494_vm0, %v5315_v61  ;;  %4478 = vmatmul.mubr.msk.bf16.vlgmr.msra.gmra.mxu1 %vm494_vm0, %v5315_v61 }
 0x9f3   : > { %4466 = vmatpush3.bf16.msra.mxu0 %v4684_v8  ;;  %4490 = vmatpush3.bf16.msra.mxu1 %v4685_v10 }
 0x9f4   : > { %4467 = vmatprep.subr.bf16.mxu0 %v4806_v9  ;;  %4491 = vmatprep.subr.bf16.mxu1 %v4806_v9 }
 0x9f5   : > { %4469 = vmatprep.mubr.msk.bf16.mxu0 %vm4807_vm1, %v4806_v9  ;;  %4493 = vmatprep.mubr.msk.bf16.mxu1 %vm4807_vm1, %v4806_v9 }
 0x9f7   : > { %4468 = vmatpush3.bf16.msra.mxu0 %v4686_v11  ;;  %4492 = vmatpush3.bf16.msra.mxu1 %v4687_v12 }
 0x9f8   : > { %4481 = vmatprep.subr.bf16.mxu0 %v4806_v9  ;;  %4505 = vmatprep.subr.bf16.mxu1 %v4806_v9 }
 0x9fa   : > { %4470 = vmatmul.mubr.msk.bf16.vlgmr.msra.gmra.mxu0 %vm494_vm0, %v5315_v61  ;;  %4494 = vmatmul.mubr.msk.bf16.vlgmr.msra.gmra.mxu1 %vm494_vm0, %v5315_v61 }
 0x9fb   : > { %4482 = vmatpush3.bf16.msra.mxu0 %v4688_v13  ;;  %4485 = vmatprep.mubr.msk.bf16.mxu0 %vm4807_vm1, %v4806_v9  ;;  %v3992_v13 = vld [vmem:[%s5675_s4 + $0x13] ss:$0 sm:$0xff] }
 0x9fc   : > { %4483 = vmatprep.subr.bf16.mxu0 %v4806_v9  ;;  %4507 = vmatprep.mubr.msk.bf16.mxu1 %vm4807_vm1, %v4806_v9 }
 0x9ff   : > { %4484 = vmatpush3.bf16.msra.mxu0 %v4689_v14 }
 0xa00   : > { %4497 = vmatprep.subr.bf16.mxu0 %v4806_v9 }
 0xa02   : > { %4486 = vmatmul.mubr.msk.bf16.vlgmr.msra.gmra.mxu0 %vm494_vm0, %v5315_v61 }
 0xa03   : > { %4498 = vmatpush3.bf16.msra.mxu0 %v4690_v15  ;;  %4501 = vmatprep.mubr.msk.bf16.mxu0 %vm4807_vm1, %v4806_v9  ;;  %v3988_v15 = vld [vmem:[%s5675_s4 + $0xf] ss:$0 sm:$0xff] }
 0xa04   : > { %4499 = vmatprep.subr.bf16.mxu0 %v4806_v9 }
 0xa07   : > { %4500 = vmatpush3.bf16.msra.mxu0 %v4691_v16 }
 0xa08   : > { %4511 = vmatprep.subr.bf16.mxu0 %v4806_v9 }
 0xa0a   : > { %4502 = vmatmul.mubr.msk.bf16.vlgmr.msra.gmra.mxu0 %vm494_vm0, %v5315_v61 }
 0xa0b   : > { %4513 = vmatprep.mubr.msk.bf16.mxu0 %vm4807_vm1, %v4806_v9 }
 0xa9a   : > { %v2326_v17 = vpop.f32.mrf.mxu0  ;;  %v2430_v18 = vpop.f32.mrf.mxu1 }
 0xa9b   : > { %v2327_v32 = vadd.f32 %v3985_v26, %v2326_v17  ;;  %v2431_v50 = vadd.f32 %v3987_v43, %v2430_v18 }
 0xa9c   : > { %v4415_v19 = vpop.f32.mrf.mxu0  ;;  %v4431_v20 = vpop.f32.mrf.mxu1 }
 0xa9d   : > { %v2904_v41 = vmul.f32 0.35355338, %v2327_v32  ;;  %v2906_v42 = vmul.f32 0.35355338, %v2431_v50 }
 0xa9e   : > { %v2329_v21 = vpop.f32.mrf.mxu0  ;;  %v2433_v22 = vpop.f32.mrf.mxu1 }
 0xa9f   : > { %v2908_v49 = vpack.c.bf16 %v2904_v41, %v2904_v41  ;;  %v2910_v3 = vpack.c.bf16 %v2906_v42, %v2906_v42 }
 0xaa0   : > { %v4416_v23 = vpop.f32.mrf.mxu0  ;;  %v4432_v24 = vpop.f32.mrf.mxu1 }
 0xaa2   : > { %v2378_v27 = vpop.f32.mrf.mxu0  ;;  %v2534_v28 = vpop.f32.mrf.mxu1 }
 0xaa3   : > { %v2535_v29 = vadd.f32 %v3989_v25, %v2534_v28  ;;  %v2379_v4 = vadd.f32 %v3986_v59, %v2378_v27 }
 0xaa4   : > { %v4423_v30 = vpop.f32.mrf.mxu0  ;;  %v4447_v31 = vpop.f32.mrf.mxu1 }
 0xaa5   : > { %v2912_v33 = vpack.c.bf16 %v2535_v29, %v2535_v29  ;;  %v2905_v14 = vmul.f32 0.35355338, %v2379_v4  ;;  %v3994_v29 = vld [vmem:[%s5675_s4 + $0x15] ss:$0 sm:$0xff] }
 0xaa6   : > { %v2381_v34 = vpop.f32.mrf.mxu0  ;;  %v2537_v35 = vpop.f32.mrf.mxu1 }
 0xaa7   : > { %v2924_v36 = vsel %vm1299_vm2, %v2912_v33, 0  ;;  %v2909_v21 = vpack.c.bf16 %v2905_v14, %v2905_v14 }
 0xaa8   : > { %v4424_v38 = vpop.f32.mrf.mxu0  ;;  %v4448_v39 = vpop.f32.mrf.mxu1  ;;  %4506 = vmatpush3.bf16.xpose.msra.mxu1 %v2924_v36 }
 0xaa9   : > { %4517 = vmatprep.subr.bf16.mxu1 %v4806_v9 }
 0xaaa   : > { %v2482_v44 = vpop.f32.mrf.mxu0  ;;  %v2638_v45 = vpop.f32.mrf.mxu1 }
 0xaab   : > { %v2639_v46 = vadd.f32 %v3991_v40, %v2638_v45  ;;  %v2483_v22 = vadd.f32 %v3988_v15, %v2482_v44 }
 0xaac   : > { %v4439_v47 = vpop.f32.mrf.mxu0  ;;  %v4463_v48 = vpop.f32.mrf.mxu1 }
 0xaad   : > { %v2914_v51 = vpack.c.bf16 %v2639_v46, %v2639_v46  ;;  %v2907_v30 = vmul.f32 0.35355338, %v2483_v22 }
 0xaae   : > { %v2485_v52 = vpop.f32.mrf.mxu0  ;;  %v2641_v53 = vpop.f32.mrf.mxu1 }
 0xaaf   : > { %v3016_v54 = vsel %vm1299_vm2, %v2914_v51, 0  ;;  %4508 = vmatmul.mubr.msk.bf16.vlgmr.msra.gmra.mxu1 %vm1299_vm2, %v2908_v49  ;;  %v2911_v34 = vpack.c.bf16 %v2907_v30, %v2907_v30 }
 0xab0   : > { %v4440_v55 = vpop.f32.mrf.mxu0  ;;  %v4464_v56 = vpop.f32.mrf.mxu1  ;;  %4518 = vmatpush3.bf16.xpose.msra.mxu1 %v3016_v54  ;;  %4519 = vmatprep.mubr.msk.bf16.mxu1 %vm4807_vm1, %v4806_v9 }
 0xab1   : > { %4529 = vmatprep.subr.bf16.mxu1 %v4806_v9 }
 0xab2   : > { %v2586_v60 = vpop.f32.mrf.mxu0  ;;  %v2742_v61 = vpop.f32.mrf.mxu1 }
 0xab3   : > { %v2587_v62 = vadd.f32 %v3990_v57, %v2586_v60  ;;  %v2743_v63 = vadd.f32 %v3993_v58, %v2742_v61 }
 0xab4   : > { %v4455_v2 = vpop.f32.mrf.mxu0  ;;  %v4479_v0 = vpop.f32.mrf.mxu1 }
 0xab5   : > { %v2913_v1 = vpack.c.bf16 %v2587_v62, %v2587_v62  ;;  %v2916_v5 = vpack.c.bf16 %v2743_v63, %v2743_v63 }
 0xab6   : > { %v2589_v6 = vpop.f32.mrf.mxu0  ;;  %v2745_v7 = vpop.f32.mrf.mxu1 }
 0xab7   : > { %v2970_v8 = vsel %vm1299_vm2, %v2913_v1, 0  ;;  %v3156_v10 = vsel %vm1535_vm3, %v2916_v5, 0  ;;  %4520 = vmatmul.mubr.msk.bf16.vlgmr.msra.gmra.mxu1 %vm1299_vm2, %v2910_v3 }
 0xab8   : > { %v4456_v11 = vpop.f32.mrf.mxu0  ;;  %v4480_v12 = vpop.f32.mrf.mxu1  ;;  %4512 = vmatpush3.bf16.xpose.msra.mxu0 %v2970_v8  ;;  %4530 = vmatpush3.bf16.msra.mxu1 %v3156_v10 }
 0xab9   : > { %4523 = vmatprep.subr.bf16.mxu0 %v4806_v9  ;;  %4531 = vmatprep.mubr.msk.bf16.mxu1 %vm4807_vm1, %v4806_v9 }
 0xaba   : > { %v2690_v16 = vpop.f32.mrf.mxu0  ;;  %v5479_v17 = vpop.f32.mrf.mxu1  ;;  %4541 = vmatprep.subr.bf16.mxu1 %v4806_v9 }
 0xabb   : > { %v2691_v18 = vadd.f32 %v3992_v13, %v2690_v16 }
 0xabc   : > { %v4471_v19 = vpop.f32.mrf.mxu0  ;;  %v4495_v20 = vpop.f32.mrf.mxu1 }
 0xabd   : > { %v2915_v23 = vpack.c.bf16 %v2691_v18, %v2691_v18 }
 0xabe   : > { %v2693_v24 = vpop.f32.mrf.mxu0  ;;  %v2849_v25 = vpop.f32.mrf.mxu1 }
 0xabf   : > { %v3062_v26 = vsel %vm1299_vm2, %v2915_v23, 0  ;;  %4514 = vmatmul.mubr.msk.bf16.vlgmr.msra.gmra.mxu0 %vm1299_vm2, %v2909_v21  ;;  %v3995_v23 = vld [vmem:[%s5675_s4 + $0x16] ss:$0 sm:$0xff] }
 0xac0   : > { %v4472_v27 = vpop.f32.mrf.mxu0  ;;  %v4496_v28 = vpop.f32.mrf.mxu1  ;;  %4524 = vmatpush3.bf16.xpose.msra.mxu0 %v3062_v26  ;;  %4525 = vmatprep.mubr.msk.bf16.mxu0 %vm4807_vm1, %v4806_v9  ;;  %v2847_v25 = vadd.f32 %v3995_v23, %v5479_v17  ;;  %v3996_v17 = vld [vmem:[%s5675_s4 + $0x17] ss:$0 sm:$0xff]  ;;  %s3779_s4 = scalar_lea.hbm %s5661_s15, %s4082_s23 }
 0xac1   : > { %4535 = vmatprep.subr.bf16.mxu0 %v4806_v9 }
 0xac2   : > { %v2794_v31 = vpop.f32.mrf.mxu0  ;;  %v2918_v27 = vpack.c.bf16 %v2847_v25, %v2847_v25 }
 0xac3   : > { %v2795_v32 = vadd.f32 %v3994_v29, %v2794_v31 }
 0xac4   : > { %v4487_v33 = vpop.f32.mrf.mxu0  ;;  %v3248_v31 = vsel %vm1535_vm3, %v2918_v27, 0  ;;  %v4050_v27 = vld [vmem:[%s5652_s6 + $0x1] ss:$0 sm:$0xff] }
 0xac5   : > { %v2917_v35 = vpack.c.bf16 %v2795_v32, %v2795_v32 }
 0xac6   : > { %v2797_v36 = vpop.f32.mrf.mxu0 }
 0xac7   : > { %v3202_v38 = vsel %vm1535_vm3, %v2917_v35, 0  ;;  %4526 = vmatmul.mubr.msk.bf16.vlgmr.msra.gmra.mxu0 %vm1299_vm2, %v2911_v34 }
 0xac8   : > { %v4488_v39 = vpop.f32.mrf.mxu0  ;;  %4536 = vmatpush3.bf16.msra.mxu0 %v3202_v38  ;;  %4537 = vmatprep.mubr.msk.bf16.mxu0 %vm4807_vm1, %v4806_v9 }
 0xac9   : > { %4547 = vmatprep.subr.bf16.mxu0 %v4806_v9 }
 0xaca   : > { %v5495_v40 = vpop.f32.mrf.mxu0 }
 0xacb   : > { %v2899_v36 = vadd.f32 %v3996_v17, %v5495_v40 }
 0xacc   : > { %v4503_v41 = vpop.f32.mrf.mxu0 }
 0xacd   : > { %v2919_v39 = vpack.c.bf16 %v2899_v36, %v2899_v36 }
 0xace   : > { %v2901_v43 = vpop.f32.mrf.mxu0 }
 0xad0   : > { %v4504_v44 = vpop.f32.mrf.mxu0 }
 0xad1   : > { %v3294_v44 = vsel %vm1535_vm3, %v2919_v39, 0 }
 0xb6f   : > { %v2960_v45 = vpop.f32.mrf.mxu1 }
 0xb70   : > { %v3104_v46 = vsel %vm1299_vm2, %v2960_v45, -inf }
 0xb71   : > { %3105 = vmax.xlane.f32.xlu0 %v3104_v46  ;;  %v4509_v47 = vpop.f32.mrf.mxu1 }
 0xb72   : > { %v4041_v47 = vld [vmem:[%s5676_s5 + $0x10] sm:$0xf] }
 0xb73   : > { %v2963_v48 = vpop.f32.mrf.mxu1 }
 0xb74   : > { %v3349_v48 = vsel %vm1535_vm3, %v4041_v47, 0 }
 0xb75   : > { %v4510_v49 = vpop.f32.mrf.mxu1 }
 0xb76   : > { %v4042_v49 = vld [vmem:[%s5676_s5 + $0x14] sm:$0xf] }
 0xb77   : > { %v3052_v50 = vpop.f32.mrf.mxu1 }
 0xb78   : > { %v3110_v51 = vsel %vm1299_vm2, %v3052_v50, -inf }
 0xb79   : > { %3111 = vmax.xlane.f32.xlu0 %v3110_v51  ;;  %v4521_v52 = vpop.f32.mrf.mxu1  ;;  %v4043_v51 = vld [vmem:[%s5676_s5 + $0x18] sm:$0xf] }
 0xb7b   : > { %v3055_v53 = vpop.f32.mrf.mxu1 }
 0xb7d   : > { %v4522_v54 = vpop.f32.mrf.mxu1 }
 0xb7e   : > { %v3441_v54 = vsel %vm1535_vm3, %v4043_v51, 0 }
 0xb7f   : > { %v3006_v55 = vpop.f32.mrf.mxu0 }
 0xb80   : > { %v3107_v56 = vsel %vm1299_vm2, %v3006_v55, -inf }
 0xb81   : > { %3108 = vmax.xlane.f32.xlu1 %v3107_v56  ;;  %v4515_v57 = vpop.f32.mrf.mxu0 }
 0xb83   : > { %v3009_v58 = vpop.f32.mrf.mxu0 }
 0xb85   : > { %v4516_v42 = vpop.f32.mrf.mxu0 }
 0xb87   : > { %v3098_v59 = vpop.f32.mrf.mxu0 }
 0xb88   : > { %v3113_v60 = vsel %vm1299_vm2, %v3098_v59, -inf }
 0xb89   : > { %3114 = vmax.xlane.f32.xlu1 %v3113_v60  ;;  %v4527_v61 = vpop.f32.mrf.mxu0 }
 0xb8b   : > { %v3101_v62 = vpop.f32.mrf.mxu0 }
 0xb8c   : > { %v4044_v62 = vld [vmem:[%s5676_s5 + $0x1c] sm:$0xf]  ;;  %s3768_s5 = scalar_lea.sflag [#allocation3], %s483_s0 }
 0xb8d   : > { %v4528_v63 = vpop.f32.mrf.mxu0 }
 0xbfa   : > { %v3106_v2 = vpop.xlane.xlu0 %3105 }
 0xbfb   : > { %v3116_v0 = vsub.f32 %v2960_v45, %v3106_v2 }
 0xbfd   : > { %v3120_v3 = vmul.f32 1.442695, %v3116_v0  ;;  %v3487_v0 = vsel %vm1535_vm3, %v4044_v62, 0 }
 0xbff   : > { %4722 = vpow2.f32 %v3120_v3 }
 0xc02   : > { %v3112_v4 = vpop.xlane.xlu0 %3111 }
 0xc03   : > { %v3118_v1 = vsub.f32 %v3052_v50, %v3112_v4  ;;  %v3395_v50 = vsel %vm1535_vm3, %v4042_v49, 0 }
 0xc05   : > { %v3124_v5 = vmul.f32 1.442695, %v3118_v1 }
 0xc07   : > { %4724 = vpow2.f32 %v3124_v5 }
 0xc0a   : > { %v3109_v6 = vpop.xlane.xlu1 %3108 }
 0xc0b   : > { %v3117_v7 = vsub.f32 %v3006_v55, %v3109_v6 }
 0xc0c   : > { %v4723_v8 = vpop.eup %4722 }
 0xc0d   : > { %v3122_v10 = vmul.f32 1.442695, %v3117_v7  ;;  %v3128_v11 = vsel %vm1299_vm2, %v4723_v8, 0.0 }
 0xc0e   : > { %3129 = vadd.xlane.f32.xlu0 %v3128_v11 }
 0xc0f   : > { %4726 = vpow2.f32 %v3122_v10 }
 0xc12   : > { %v3115_v12 = vpop.xlane.xlu1 %3114 }
 0xc13   : > { %v3119_v13 = vsub.f32 %v3098_v59, %v3115_v12 }
 0xc14   : > { %v4725_v14 = vpop.eup %4724 }
 0xc15   : > { %v3126_v15 = vmul.f32 1.442695, %v3119_v13  ;;  %v3134_v16 = vsel %vm1299_vm2, %v4725_v14, 0.0 }
 0xc16   : > { %3135 = vadd.xlane.f32.xlu0 %v3134_v16 }
 0xc17   : > { %4728 = vpow2.f32 %v3126_v15 }
 0xc1c   : > { %v4727_v18 = vpop.eup %4726 }
 0xc1d   : > { %v3131_v19 = vsel %vm1299_vm2, %v4727_v18, 0.0 }
 0xc1e   : > { %3132 = vadd.xlane.f32.xlu1 %v3131_v19 }
 0xc24   : > { %v4729_v20 = vpop.eup %4728 }
 0xc25   : > { %v3137_v21 = vsel %vm1299_vm2, %v4729_v20, 0.0 }
 0xc26   : > { %3138 = vadd.xlane.f32.xlu1 %v3137_v21 }
 0xc97   : > { %v3130_v22 = vpop.xlane.xlu0 %3129 }
 0xc98   : > { %4730 = vrcp.f32 %v3130_v22 }
 0xc9f   : > { %v3136_v24 = vpop.xlane.xlu0 %3135 }
 0xca0   : > { %4732 = vrcp.f32 %v3136_v24 }
 0xca5   : > { %v4731_v26 = vpop.eup %4730 }
 0xca6   : > { %v3144_v28 = vmul.f32 %v4731_v26, %v4723_v8 }
 0xca7   : > { %v3133_v29 = vpop.xlane.xlu1 %3132 }
 0xca8   : > { %4734 = vrcp.f32 %v3133_v29  ;;  %v3148_v30 = vpack.c.bf16 %v3144_v28, %v3144_v28 }
 0xcaa   : > { %4532 = vmatmul.mubr.msk.bf16.vlgmr.msra.gmra.mxu1 %vm1299_vm2, %v3148_v30 }
 0xcab   : > { %4542 = vmatpush3.bf16.msra.mxu1 %v3248_v31  ;;  %4543 = vmatprep.mubr.msk.bf16.mxu1 %vm4807_vm1, %v4806_v9 }
 0xcac   : > { %4553 = vmatprep.subr.bf16.mxu1 %v4806_v9 }
 0xcad   : > { %v4733_v32 = vpop.eup %4732 }
 0xcae   : > { %v3146_v33 = vmul.f32 %v4733_v32, %v4725_v14 }
 0xcaf   : > { %v3139_v34 = vpop.xlane.xlu1 %3138 }
 0xcb0   : > { %4736 = vrcp.f32 %v3139_v34  ;;  %v3150_v35 = vpack.c.bf16 %v3146_v33, %v3146_v33 }
 0xcb2   : > { %4544 = vmatmul.mubr.msk.bf16.vlgmr.msra.gmra.mxu1 %vm1299_vm2, %v3150_v35 }
 0xcb3   : > { %4555 = vmatprep.mubr.msk.bf16.mxu1 %vm4807_vm1, %v4806_v9  ;;  %4554 = vmatpush3.bf16.msra.mxu1 %v3349_v48  ;;  %v4054_v48 = vld [vmem:[%s5654_s8 + $0x1] ss:$0 sm:$0xff] }
 0xcb4   : > { %4565 = vmatprep.subr.bf16.mxu1 %v4806_v9 }
 0xcb5   : > { %v4735_v38 = vpop.eup %4734 }
 0xcb6   : > { %v3145_v41 = vmul.f32 %v4735_v38, %v4727_v18 }
 0xcb8   : > { %v3149_v43 = vpack.c.bf16 %v3145_v41, %v3145_v41  ;;  %v4692_v41 = vld [vmem:[%s5655_s9 + $0x18] sm:$0xff]  }
 0xcba   : > { %4538 = vmatmul.mubr.msk.bf16.vlgmr.msra.gmra.mxu0 %vm1299_vm2, %v3149_v43 }
 0xcbb   : > { %4548 = vmatpush3.bf16.msra.mxu0 %v3294_v44  ;;  %4549 = vmatprep.mubr.msk.bf16.mxu0 %vm4807_vm1, %v4806_v9 }
 0xcbc   : > { %4559 = vmatprep.subr.bf16.mxu0 %v4806_v9 }
 0xcbd   : > { %v4737_v40 = vpop.eup %4736 }
 0xcbe   : > { %v3147_v45 = vmul.f32 %v4737_v40, %v4729_v20 }
 0xcc0   : > { %v3151_v46 = vpack.c.bf16 %v3147_v45, %v3147_v45 }
 0xcc2   : > { %4550 = vmatmul.mubr.msk.bf16.vlgmr.msra.gmra.mxu0 %vm1299_vm2, %v3151_v46  ;;  %v4053_v46 = vld [vmem:[%s5653_s7 + $0x1] ss:$0 sm:$0xff] }
 0xcc3   : > { %4561 = vmatprep.mubr.msk.bf16.mxu0 %vm4807_vm1, %v4806_v9  ;;  %4560 = vmatpush3.bf16.msra.mxu0 %v3395_v50 }
 0xcc4   : > { %4571 = vmatprep.subr.bf16.mxu0 %v4806_v9 }
 0xd6a   : > { %v3192_v52 = vpop.f32.mrf.mxu1 }
 0xd6b   : > { %v3336_v53 = vpack.c.bf16 %v3192_v52, %v3192_v52  ;;  %v4694_v52 = vld [vmem:[%s5657_s11 + $0x38] sm:$0xff]  }
 0xd6c   : > { %v4533_v55 = vpop.f32.mrf.mxu1 }
 0xd6d   : > { %4556 = vmatmul.mubr.msk.bf16.vlgmr.msra.gmra.mxu1 %vm1299_vm2, %v3336_v53  ;;  %v4695_v53 = vld [vmem:[%s5657_s11 + $0x30] sm:$0xff]   ;;  %v4697_v55 = vld [vmem:[%s5657_s11 + $0x20] sm:$0xff]  }
 0xd6e   : > { %v3195_v56 = vpop.f32.mrf.mxu1  ;;  %4566 = vmatpush3.bf16.msra.mxu1 %v3441_v54  ;;  %4567 = vmatprep.mubr.msk.bf16.mxu1 %vm4807_vm1, %v4806_v9  ;;  %v4696_v54 = vld [vmem:[%s5657_s11 + $0x28] sm:$0xff]  }
 0xd6f   : > { %4577 = vmatprep.subr.bf16.mxu1 %v4806_v9  ;;  %v4060_v56 = vld [vmem:[%s5656_s10 + $0x1] ss:$0 sm:$0xff] }
 0xd70   : > { %v4534_v57 = vpop.f32.mrf.mxu1 }
 0xd72   : > { %v3284_v58 = vpop.f32.mrf.mxu1 }
 0xd73   : > { %v3338_v42 = vpack.c.bf16 %v3284_v58, %v3284_v58 }
 0xd74   : > { %v4545_v59 = vpop.f32.mrf.mxu1 }
 0xd75   : > { %4568 = vmatmul.mubr.msk.bf16.vlgmr.msra.gmra.mxu1 %vm1299_vm2, %v3338_v42 }
 0xd76   : > { %v3287_v60 = vpop.f32.mrf.mxu1  ;;  %4581 = vmatprep.mubr.msk.bf16.mxu1 %vm4807_vm1, %v4806_v9  ;;  %4578 = vmatpush3.bf16.msra.mxu1 %v4692_v41 }
 0xd77   : > { %4579 = vmatprep.subr.bf16.mxu1 %v4806_v9 }
 0xd78   : > { %v4546_v61 = vpop.f32.mrf.mxu1 }
 0xd7a   : > { %v3238_v63 = vpop.f32.mrf.mxu0 }
 0xd7b   : > { %v3337_v2 = vpack.c.bf16 %v3238_v63, %v3238_v63 }
 0xd7c   : > { %v4539_v3 = vpop.f32.mrf.mxu0 }
 0xd7d   : > { %4562 = vmatmul.mubr.msk.bf16.vlgmr.msra.gmra.mxu0 %vm1299_vm2, %v3337_v2 }
 0xd7e   : > { %v3241_v4 = vpop.f32.mrf.mxu0  ;;  %4572 = vmatpush3.bf16.msra.mxu0 %v3487_v0  ;;  %4573 = vmatprep.mubr.msk.bf16.mxu0 %vm4807_vm1, %v4806_v9 }
 0xd7f   : > { %4585 = vmatprep.subr.bf16.mxu0 %v4806_v9 }
 0xd80   : > { %v4540_v1 = vpop.f32.mrf.mxu0 }
 0xd82   : > { %v3330_v5 = vpop.f32.mrf.mxu0 }
 0xd83   : > { %v3339_v6 = vpack.c.bf16 %v3330_v5, %v3330_v5 }
 0xd84   : > { %v4551_v7 = vpop.f32.mrf.mxu0 }
 0xd85   : > { %4574 = vmatmul.mubr.msk.bf16.vlgmr.msra.gmra.mxu0 %vm1299_vm2, %v3339_v6  ;;  %v4073_v6 = vld [vmem:[%s5658_s12 + $0x1] ss:$0 sm:$0xff] }
 0xd86   : > { %v3333_v8 = vpop.f32.mrf.mxu0  ;;  %4593 = vmatprep.mubr.msk.bf16.mxu0 %vm4807_vm1, %v4806_v9  ;;  %4586 = vmatpush3.bf16.msra.mxu0 %v4694_v52 }
 0xd87   : > { %4587 = vmatprep.subr.bf16.mxu0 %v4806_v9 }
 0xd88   : > { %v4552_v10 = vpop.f32.mrf.mxu0 }
 0xd8a   : > { %4588 = vmatpush3.bf16.msra.mxu0 %v4695_v53 }
 0xd8b   : > { %4589 = vmatprep.subr.bf16.mxu0 %v4806_v9 }
 0xd8e   : > { %4590 = vmatpush3.bf16.msra.mxu0 %v4696_v54 }
 0xd8f   : > { %4591 = vmatprep.subr.bf16.mxu0 %v4806_v9 }
 0xd92   : > { %4592 = vmatpush3.bf16.msra.mxu0 %v4697_v55 }
 0xe2d   : > { %v3385_v11 = vpop.f32.mrf.mxu1 }
 0xe2f   : > { %v4557_v12 = vpop.f32.mrf.mxu1 }
 0xe31   : > { %v3388_v13 = vpop.f32.mrf.mxu1 }
 0xe33   : > { %v4558_v14 = vpop.f32.mrf.mxu1 }
 0xe35   : > { %v3477_v15 = vpop.f32.mrf.mxu1 }
 0xe37   : > { %v4569_v16 = vpop.f32.mrf.mxu1 }
 0xe39   : > { %v3480_v18 = vpop.f32.mrf.mxu1 }
 0xe3b   : > { %v4570_v19 = vpop.f32.mrf.mxu1 }
 0xe3d   : > { %v3431_v20 = vpop.f32.mrf.mxu0 }
 0xe3e   : > { %v3529_v22 = vadd.f32 %v3431_v20, %v3385_v11 }
 0xe3f   : > { %v4563_v21 = vpop.f32.mrf.mxu0 }
 0xe40   : > { %v3530_v25 = vadd.f32 %v3529_v22, %v3477_v15 }
 0xe41   : > { %v3434_v23 = vpop.f32.mrf.mxu0 }
 0xe43   : > { %v4564_v24 = vpop.f32.mrf.mxu0 }
 0xe45   : > { %v3523_v26 = vpop.f32.mrf.mxu0 }
 0xe46   : > { %v3531_v28 = vadd.f32 %v3530_v25, %v3523_v26  ;;  %v4079_v25 = vld [vmem:[%s5659_s13] ss:$0 sm:$0xff] }
 0xe47   : > { %v4575_v29 = vpop.f32.mrf.mxu0 }
 0xe48   : > { %v3540_v30 = vadd.f32 %v4050_v27, %v3531_v28  ;;  %v4080_v27 = vld [vmem:[%s5660_s14] ss:$0 sm:$0xff] }
 0xe49   : > { %v3526_v31 = vpop.f32.mrf.mxu0 }
 0xe4a   : > { %v3541_v32 = vadd.f32 %v3540_v30, %v5281_v37  ;;  %v4693_v37 = vld [vmem:[%s5655_s9 + $0x10] sm:$0xff]  }
 0xe4b   : > { %v4576_v33 = vpop.f32.mrf.mxu0  ;;  %4580 = vmatpush3.bf16.msra.mxu1 %v4693_v37 }
 0xe4c   : > { %v3546_v17 = vsel %vm494_vm0, %v3541_v32, 0.0 }
 0xe4d   : > { %3547 = vadd.xlane.f32.xlu0 %v3546_v17 }
 0xed6   : > { %v3548_v34 = vpop.xlane.xlu0 %3547 }
 0xed7   : > { %v3549_v35 = vmul.f32 0.03125, %v3548_v34 }
 0xed9   : > { %v3550_v36 = vsub.f32 %v3541_v32, %v3549_v35 }
 0xedb   : > { %v3551_v38 = vmul.f32 %v3550_v36, %v3550_v36 }
 0xedd   : > { %v3552_v39 = vsel %vm494_vm0, %v3551_v38, 0.0 }
 0xede   : > { %3553 = vadd.xlane.f32.xlu1 %v3552_v39 }
 0xf67   : > { %v3554_v43 = vpop.xlane.xlu1 %3553 }
 0xf68   : > { %v3555_v44 = vmul.f32 0.03125, %v3554_v43 }
 0xf6a   : > { %v3556_v40 = vadd.f32 1e-06, %v3555_v44 }
 0xf6c   : > { %4738 = vrsqrt.f32 %v3556_v40 }
 0xf79   : > { %v4739_v45 = vpop.eup %4738 }
 0xf7a   : > { %v3558_v47 = vmul.f32 %v4739_v45, %v3550_v36 }
 0xf7c   : > { %v3565_v49 = vmul.f32 %v4053_v46, %v3558_v47 }
 0xf7e   : > { %v3572_v50 = vadd.f32 %v4054_v48, %v3565_v49 }
 0xf80   : > { %v3573_v51 = vpack.c.bf16 %v3572_v50, %v3572_v50 }
 0xf82   : > { %4582 = vmatmul.mubr.msk.bf16.vlgmr.msra.gmra.mxu1 %vm494_vm0, %v3573_v51 }
0x1042   : > { %v3636_v57 = vpop.f32.mrf.mxu1 }
0x1043   : > { %v3637_v58 = vadd.f32 %v4060_v56, %v3636_v57 }
0x1044   : > { %v4583_v42 = vpop.f32.mrf.mxu1 }
0x1045   : > { %v3643_v59 = vmul.f32 0.044715, %v3637_v58  ;;  %v3642_v4 = vmul.f32 0.5, %v3637_v58 }
0x1046   : > { %v3639_v60 = vpop.f32.mrf.mxu1 }
0x1047   : > { %v3644_v61 = vmul.f32 %v3643_v59, %v3637_v58 }
0x1048   : > { %v4584_v62 = vpop.f32.mrf.mxu1 }
0x1049   : > { %v3645_v63 = vmul.f32 %v3644_v61, %v3637_v58 }
0x104b   : > { %v3646_v2 = vadd.f32 %v3645_v63, %v3637_v58 }
0x104d   : > { %v3647_v0 = vmul.f32 0.7978846, %v3646_v2 }
0x104f   : > { %4740 = vtanh.f32 %v3647_v0 }
0x105c   : > { %v4741_v3 = vpop.eup %4740 }
0x105d   : > { %v3649_v1 = vadd.f32 1.0, %v4741_v3 }
0x105f   : > { %v3650_v9 = vmul.f32 %v3649_v1, %v3642_v4 }
0x1061   : > { %v3651_v5 = vpack.c.bf16 %v3650_v9, %v3650_v9 }
0x1063   : > { %4594 = vmatmul.mubr.msk.bf16.vlgmr.msra.gmra.mxu0 %vm2066_vm4, %v3651_v5 }
0x1123   : > { %v3730_v7 = vpop.f32.mrf.mxu0 }
0x1124   : > { %v3731_v8 = vadd.f32 %v4073_v6, %v3730_v7 }
0x1125   : > { %v4595_v10 = vpop.f32.mrf.mxu0 }
0x1126   : > { %v3736_v11 = vadd.f32 %v3731_v8, %v3541_v32 }
0x1127   : > { %v3733_v12 = vpop.f32.mrf.mxu0 }
0x1128   : > { %v3739_v13 = vsel %vm494_vm0, %v3736_v11, 0.0 }
0x1129   : > { %3740 = vadd.xlane.f32.xlu0 %v3739_v13  ;;  %v4596_v14 = vpop.f32.mrf.mxu0 }
0x11b2   : > { %v3741_v15 = vpop.xlane.xlu0 %3740 }
0x11b3   : > { %v3742_v16 = vmul.f32 0.03125, %v3741_v15 }
0x11b5   : > { %v3743_v18 = vsub.f32 %v3736_v11, %v3742_v16 }
0x11b7   : > { %v3744_v19 = vmul.f32 %v3743_v18, %v3743_v18 }
0x11b9   : > { %v3745_v20 = vsel %vm494_vm0, %v3744_v19, 0.0 }
0x11ba   : > { %3746 = vadd.xlane.f32.xlu1 %v3745_v20 }
0x1243   : > { %v3747_v21 = vpop.xlane.xlu1 %3746 }
0x1244   : > { %v3748_v22 = vmul.f32 0.03125, %v3747_v21 }
0x1246   : > { %v3749_v23 = vadd.f32 1e-06, %v3748_v22 }
0x1248   : > { %4742 = vrsqrt.f32 %v3749_v23 }
0x1255   : > { %v4743_v24 = vpop.eup %4742 }
0x1256   : > { %v3751_v26 = vmul.f32 %v4743_v24, %v3743_v18 }
0x1258   : > { %v3758_v28 = vmul.f32 %v4079_v25, %v3751_v26 }
0x125a   : > { %v3765_v29 = vadd.f32 %v4080_v27, %v3758_v28 }
0x125c   : > { %3766 = vst.msk [vmem:[%s485_s25] sm:$0xff] %vm494_vm0, %v3765_v29 }
0x125d   : > { %4757 = shalt.err (!%p4754_p3)
}
0x125e   : > { %s4758_s2 = scalar_lea.hbm %s3779_s4, 128  ;;  %s4762_s27 = scalar_lea.hbm %s5661_s15, 256 }
0x125f   : > { %p4759_p4 = scmp.ne.s32.totalorder %s3779_s4, %s4758_s2  ;;  %p4763_p9 = scmp.lt.s32.totalorder %s3779_s4, %s5661_s15 }
0x1260   : > { %p4764_p10 = scmp.lt.s32.totalorder %s4762_s27, %s4758_s2 }
0x1261   : > { %p4760_p7 = pnand %p4759_p4, %p4927_p5 }
0x1262   : > { %p4765_p11 = por %p4764_p10, %p4763_p9 }
0x1263   : > { %p4761_p8 = pneg %p4760_p7 }
0x1265   : > { %p4766_p12 = pnand %p4765_p11, %p4761_p8 }
0x1267   : > { %4769 = shalt.err (!%p4766_p12)
}
0x1268   : > { %4597 = dma.vmem_to_hbm [thread:$0]  (%p4927_p5), %s3782_s1, 128, %s3779_s4, %s3768_s5  }
0x1269 PF: > { %p4603_p13 = scmp.ge.s32.totalorder %s4804_s21, 2  ;;  %s3793_s25 = sand.u32 1, %s4792_s18  }
0x126a   : > { %s3794_s26 = scalar_lea.sflag [#allocation3], %s3793_s25 }
0x126b   : > { %p4600_p0 = pnand %p4603_p13, %p4931_p6 }
0x126d   : > { %p4601_p1 = pneg %p4600_p0 }
0x126f   : > { %4787 = dma.done.wait (%p4601_p1), %s3794_s26, 128  }
0x1270   : > { %4789 = vsyncadd (%p4601_p1), %s3794_s26, 4294967168  ;;  %s5677_s30 = sld [smem:[#allocation5_spill]]  ;;  %p25_p2 = scmp.ge.s32.totalorder %s4914_s24, 4  }
0x1271   : > { %s5678_s18 = smov %s4796_s19  ;;  %s5679_s19 = smov %s4800_s20 }
0x1272   : > { %s5681_s21 = smov %s4914_s24  ;;  %27 = sbr.rel (!%p25_p2) target bundleno = 10 (0xa), region = 127 }
0x1276   : > { %s5680_s20 = smov %s5677_s30 }
0x1277   :  { %3799 = vsyncpa [#allocation3], 1 }
0x1278   :  { %3801 = vsyncpa [#allocation3 + $0x1], 1 }

</bundles_post_ra>
